<compile_context>
chip_gen: v7x
topology: tpu7x:2x2x1
jax: 0.10.0
libtpu: 0.0.40
codegen_flags: <defaults>
</compile_context>

<pallas_src>
import functools

import jax
import jax.numpy as jnp
from jax import lax
from jax.experimental import pallas as pl
from jax.experimental.pallas import tpu as pltpu


# ---------------------------------------------------------------------------
# Fused kernel: one image per grid step, everything resident in VMEM.
#
# In-kernel layouts (per image):
#   x          : (28, 28)   [w, h]                  (input image, transposed)
#   conv1 out  : (24, 240)  [ow, co*24 + oh]
#   pool1 out  : (12, 120)  [ow', ci*12 + oh']
#   conv2 out  : (8, 160)   [ow, co*8  + oh]
#   pool2 out  : (4, 80)    [ow', co*4 + oh']
#   fc1 out    : (1, 50),  fc2/softmax out : (1, 10)
# ---------------------------------------------------------------------------
def _net_fused_kernel(x_ref, m1_ref, b1_ref, p1r_ref, p1c_ref,
                      m2_ref, b2_ref, p2r_ref, p2c_ref,
                      fw1_ref, fb1_ref, fw2_ref, fb2_ref, out_ref):
    f32 = jnp.float32
    dot = functools.partial(jnp.dot, preferred_element_type=f32)

    xt = x_ref[0]                                    # (28, 28)  [w, h]

    # conv1 + relu  -> (24, 240): sum over the 5 kernel columns of
    #   x_t[j:j+24, :] @ M1[j]   (M1[j] is the banded/expanded conv1 weight)
    y1 = dot(xt[0:24, :], m1_ref[0])
    for j in range(1, 5):
        y1 = y1 + dot(xt[j:j + 24, :], m1_ref[j])
    y1 = jnp.maximum(y1 + b1_ref[...], 0.0)

    # maxpool1 (2x2) -> (12, 120): pair rows (ow) with left 0/1 selectors,
    # pair per-channel columns (oh) with right 0/1 selectors.
    t1 = jnp.maximum(dot(p1r_ref[0], y1), dot(p1r_ref[1], y1))
    p1 = jnp.maximum(dot(t1, p1c_ref[0]), dot(t1, p1c_ref[1]))

    # conv2 + relu -> (8, 160)
    y2 = dot(p1[0:8, :], m2_ref[0])
    for j in range(1, 5):
        y2 = y2 + dot(p1[j:j + 8, :], m2_ref[j])
    y2 = jnp.maximum(y2 + b2_ref[...], 0.0)

    # maxpool2 (2x2) -> (4, 80)
    t2 = jnp.maximum(dot(p2r_ref[0], y2), dot(p2r_ref[1], y2))
    p2 = jnp.maximum(dot(t2, p2c_ref[0]), dot(t2, p2c_ref[1]))

    # fc1 + relu.  PyTorch's x.view(-1, 320) flatten (c, h, w order) is folded
    # into the pre-packed fc1 weights:  h = fb1 + sum_w p2[w, :] @ FW1p[w]
    h = fb1_ref[...]                                 # (1, 50)
    for w in range(4):
        h = h + dot(p2[w:w + 1, :], fw1_ref[w])
    h = jnp.maximum(h, 0.0)
    # TODO(synk): Dropout2d(0.5) is identity at inference; training-time channel dropout not implemented.

    # fc2 + softmax(dim=1)
    logits = dot(h, fw2_ref[...]) + fb2_ref[...]     # (1, 10)
    m = jnp.max(logits, axis=-1, keepdims=True)
    e = jnp.exp(logits - m)
    out_ref[0] = e * pl.reciprocal(jnp.sum(e, axis=-1, keepdims=True), approx=True)


# ---------------------------------------------------------------------------
# One-time weight packing (outside the per-call path)
# ---------------------------------------------------------------------------
def _expand_conv_weight(w, out_hw, in_hw):
    """(Cout, Cin, KH, KW) -> (KW, Cin*in_hw, Cout*out_hw) banded matrices M with
       M[j, ci*in_hw + h, co*out_hw + oh] = w[co, ci, h-oh, j]  (0 <= h-oh < KH),
    so that  conv(x)[co, oh, ow] = sum_j (x_T[j:j+out_hw, :] @ M[j])[ow, co*out_hw+oh]
    where x_T[w, ci*in_hw + h] = x[ci, h, w]."""
    cout, cin, kh, kw = w.shape
    band = jnp.stack([jnp.eye(out_hw, in_hw, k=i, dtype=w.dtype) for i in range(kh)])
    m = jnp.einsum('abij,ioh->jaobh', w, band)           # (KW, Cout, OH, Cin, IH)
    m = m.reshape(kw, cout * out_hw, cin * in_hw)
    return jnp.transpose(m, (0, 2, 1))                   # (KW, Cin*IH, Cout*OH)


def _pool_selectors(channels, size, dtype=jnp.float32):
    """0/1 selection matrices implementing 2x2 max-pool via matmuls.
       R: (2, size//2, size)                    -- even/odd spatial rows
       C: (2, channels*size, channels*size//2)  -- even/odd rows within each channel block."""
    half = size // 2
    k = jnp.arange(half)
    r_even = (jnp.arange(size)[None, :] == (2 * k)[:, None]).astype(dtype)
    r_odd = (jnp.arange(size)[None, :] == (2 * k + 1)[:, None]).astype(dtype)
    rows = jnp.arange(channels * size)
    cols = jnp.arange(channels * half)
    same_c = (rows[:, None] // size) == (cols[None, :] // half)
    t = rows[:, None] % size
    kk = cols[None, :] % half
    c_even = (same_c & (t == 2 * kk)).astype(dtype)
    c_odd = (same_c & (t == 2 * kk + 1)).astype(dtype)
    return jnp.stack([r_even, r_odd]), jnp.stack([c_even, c_odd])


def pack_params(params):
    """Pack PyTorch-layout parameters into the kernel layouts (done once)."""
    w1, b1, w2, b2, fw1, fb1, fw2, fb2 = params
    m1 = _expand_conv_weight(w1, 24, 28)                 # (5, 28, 240)
    m2 = _expand_conv_weight(w2, 8, 12)                  # (5, 120, 160)
    b1e = jnp.repeat(b1, 24)[None, :]                    # (1, 240): b1[co] at col co*24+oh
    b2e = jnp.repeat(b2, 8)[None, :]                     # (1, 160)
    p1r, p1c = _pool_selectors(10, 24)                   # (2,12,24), (2,240,120)
    p2r, p2c = _pool_selectors(20, 8)                    # (2,4,8),   (2,160,80)
    # fc1 weights with the PyTorch flatten order (f = co*16 + oh*4 + ow) folded in:
    #   FW1p[ow, co*4 + oh, u] = fw1[u, co*16 + oh*4 + ow]
    fw1p = jnp.transpose(fw1.reshape(50, 20, 4, 4), (3, 1, 2, 0)).reshape(4, 80, 50)
    return (m1, b1e, p1r, p1c, m2, b2e, p2r, p2c,
            fw1p, fb1[None, :], fw2.T, fb2[None, :])


# ---------------------------------------------------------------------------
# Forward pass: one fused pallas_call, grid over the batch
# ---------------------------------------------------------------------------
@jax.jit
def net_forward(x, packed):
    n = x.shape[0]
    # transposed image layout for the kernel: xt[n, w, h] = x[n, 0, h, w]
    xt = jnp.transpose(x.reshape(n, 28, 28), (0, 2, 1))

    weights = packed

    def _whole(a):
        return pl.BlockSpec(a.shape, lambda i, nd=a.ndim: (0,) * nd)

    grid_spec = pltpu.PrefetchScalarGridSpec(
        num_scalar_prefetch=0,
        grid=(n,),
        in_specs=[pl.BlockSpec((1, 28, 28), lambda i: (i, 0, 0))]
                 + [_whole(a) for a in weights],
        out_specs=pl.BlockSpec((1, 1, 10), lambda i: (i, 0, 0)),
    )
    out = pl.pallas_call(
        _net_fused_kernel,
        out_shape=jax.ShapeDtypeStruct((n, 1, 10), jnp.float32),
        grid_spec=grid_spec,
        compiler_params=pltpu.CompilerParams(
            dimension_semantics=("parallel",),   # batch axis -> both TCs on v7x
        ),
    )(xt, *weights)
    return out.reshape(n, 10)


# ---------------------------------------------------------------------------
# Pure-JAX reference (same math, XLA ops) for correctness checking
# ---------------------------------------------------------------------------
def net_forward_reference(x, params):
    w1, b1, w2, b2, fw1, fb1, fw2, fb2 = params
    dn = ('NCHW', 'OIHW', 'NCHW')
    hi = lax.Precision.HIGHEST
    y = lax.conv_general_dilated(x, w1, (1, 1), 'VALID', dimension_numbers=dn, precision=hi)
    y = jnp.maximum(y + b1[None, :, None, None], 0.0)
    y = lax.reduce_window(y, -jnp.inf, lax.max, (1, 1, 2, 2), (1, 1, 2, 2), 'VALID')
    y = lax.conv_general_dilated(y, w2, (1, 1), 'VALID', dimension_numbers=dn, precision=hi)
    y = jnp.maximum(y + b2[None, :, None, None], 0.0)
    y = lax.reduce_window(y, -jnp.inf, lax.max, (1, 1, 2, 2), (1, 1, 2, 2), 'VALID')
    y = y.reshape(y.shape[0], 320)
    y = jnp.maximum(jnp.dot(y, fw1.T, precision=hi) + fb1, 0.0)
    y = jnp.dot(y, fw2.T, precision=hi) + fb2
    return jax.nn.softmax(y, axis=1)


# ---------------------------------------------------------------------------
# Deterministic parameter init (PyTorch shapes, uniform(-1/sqrt(fan_in), ...))
# ---------------------------------------------------------------------------
def init_params(key):
    def uniform(k, shape, fan_in):
        bound = 1.0 / jnp.sqrt(jnp.float32(fan_in))
        return jax.random.uniform(k, shape, jnp.float32, -bound, bound)

    ks = jax.random.split(key, 8)
    w1 = uniform(ks[0], (10, 1, 5, 5), 1 * 5 * 5)
    b1 = uniform(ks[1], (10,), 1 * 5 * 5)
    w2 = uniform(ks[2], (20, 10, 5, 5), 10 * 5 * 5)
    b2 = uniform(ks[3], (20,), 10 * 5 * 5)
    fw1 = uniform(ks[4], (50, 320), 320)
    fb1 = uniform(ks[5], (50,), 320)
    fw2 = uniform(ks[6], (10, 50), 50)
    fb2 = uniform(ks[7], (10,), 50)
    return (w1, b1, w2, b2, fw1, fb1, fw2, fb2)


if __name__ == "__main__":
    key = jax.random.PRNGKey(0)
    k_x, k_p = jax.random.split(key)

    # MNIST-shaped input: batch=2, 1 channel, 28x28 (required for the 320-dim flatten)
    x = jax.random.normal(k_x, (2, 1, 28, 28), dtype=jnp.float32)
    params = init_params(k_p)
    packed = pack_params(params)          # one-time weight packing

    out = net_forward(x, packed)
    out = jax.block_until_ready(out)

    assert out.shape == (2, 10)
    assert bool(jnp.all(jnp.isfinite(out)))
    # softmax rows sum to ~1 (approx reciprocal => loose tolerance)
    assert bool(jnp.allclose(jnp.sum(out, axis=1), 1.0, atol=1e-3))

    # match the pure-JAX / XLA reference
    ref = net_forward_reference(x, params)
    max_diff = float(jnp.max(jnp.abs(out - ref)))
    assert max_diff < 3e-2, f"max abs diff vs reference: {max_diff}"

    print("KERNEL_OK")
</pallas_src>

<mosaic_0001>
module attributes {stable_mosaic.version = 11 : i64} {
  func.func @_net_fused_kernel(%arg0: i32, %arg1: memref<1x28x28xf32, #tpu.memory_space<vmem>>, %arg2: memref<5x28x240xf32, #tpu.memory_space<vmem>>, %arg3: memref<1x240xf32, #tpu.memory_space<vmem>>, %arg4: memref<2x12x24xf32, #tpu.memory_space<vmem>>, %arg5: memref<2x240x120xf32, #tpu.memory_space<vmem>>, %arg6: memref<5x120x160xf32, #tpu.memory_space<vmem>>, %arg7: memref<1x160xf32, #tpu.memory_space<vmem>>, %arg8: memref<2x4x8xf32, #tpu.memory_space<vmem>>, %arg9: memref<2x160x80xf32, #tpu.memory_space<vmem>>, %arg10: memref<4x80x50xf32, #tpu.memory_space<vmem>>, %arg11: memref<1x50xf32, #tpu.memory_space<vmem>>, %arg12: memref<50x10xf32, #tpu.memory_space<vmem>>, %arg13: memref<1x10xf32, #tpu.memory_space<vmem>>, %arg14: memref<1x1x10xf32, #tpu.memory_space<vmem>>) attributes {dimension_semantics = [#tpu.dimension_semantics<parallel>], iteration_bounds = array<i64: 2>, scalar_prefetch = 0 : i64, scratch_operands = 0 : i64, tpu.core_type = #tpu.core_type<tc>, window_params = [{transform_indices = @transform_0, window_bounds = array<i64: 1, 28, 28>}, {pipeline_mode = #tpu.pipeline_mode<synchronous>, transform_indices = @transform_1, window_bounds = array<i64: 5, 28, 240>}, {pipeline_mode = #tpu.pipeline_mode<synchronous>, transform_indices = @transform_2, window_bounds = array<i64: 1, 240>}, {pipeline_mode = #tpu.pipeline_mode<synchronous>, transform_indices = @transform_3, window_bounds = array<i64: 2, 12, 24>}, {pipeline_mode = #tpu.pipeline_mode<synchronous>, transform_indices = @transform_4, window_bounds = array<i64: 2, 240, 120>}, {pipeline_mode = #tpu.pipeline_mode<synchronous>, transform_indices = @transform_5, window_bounds = array<i64: 5, 120, 160>}, {pipeline_mode = #tpu.pipeline_mode<synchronous>, transform_indices = @transform_6, window_bounds = array<i64: 1, 160>}, {pipeline_mode = #tpu.pipeline_mode<synchronous>, transform_indices = @transform_7, window_bounds = array<i64: 2, 4, 8>}, {pipeline_mode = #tpu.pipeline_mode<synchronous>, transform_indices = @transform_8, window_bounds = array<i64: 2, 160, 80>}, {pipeline_mode = #tpu.pipeline_mode<synchronous>, transform_indices = @transform_9, window_bounds = array<i64: 4, 80, 50>}, {pipeline_mode = #tpu.pipeline_mode<synchronous>, transform_indices = @transform_10, window_bounds = array<i64: 1, 50>}, {pipeline_mode = #tpu.pipeline_mode<synchronous>, transform_indices = @transform_11, window_bounds = array<i64: 50, 10>}, {pipeline_mode = #tpu.pipeline_mode<synchronous>, transform_indices = @transform_12, window_bounds = array<i64: 1, 10>}, {transform_indices = @transform_13, window_bounds = array<i64: 1, 1, 10>}]} {
    %c0 = arith.constant 0 : index
    %c0_0 = arith.constant 0 : index
    %c0_1 = arith.constant 0 : index
    %0 = vector.load %arg1[%c0, %c0_0, %c0_1] : memref<1x28x28xf32, #tpu.memory_space<vmem>>, vector<1x28x28xf32>
    %1 = vector.shape_cast %0 : vector<1x28x28xf32> to vector<28x28xf32>
    %2 = vector.extract_strided_slice %1 {offsets = [0, 0], sizes = [24, 28], strides = [1, 1]} : vector<28x28xf32> to vector<24x28xf32>
    %c0_2 = arith.constant 0 : index
    %c0_3 = arith.constant 0 : index
    %c0_4 = arith.constant 0 : index
    %3 = vector.load %arg2[%c0_2, %c0_3, %c0_4] : memref<5x28x240xf32, #tpu.memory_space<vmem>>, vector<1x28x240xf32>
    %4 = vector.shape_cast %3 : vector<1x28x240xf32> to vector<28x240xf32>
    %cst = arith.constant dense<0.000000e+00> : vector<24x240xf32>
    %5 = tpu.matmul %2, %4, %cst {dimension_numbers = #tpu.dot_dimension_numbers<[1], [0], [0], [1], [0, 0, 1, 1], [], []>} : vector<24x28xf32>, vector<28x240xf32>, vector<24x240xf32> -> vector<24x240xf32>
    %6 = vector.extract_strided_slice %1 {offsets = [1, 0], sizes = [24, 28], strides = [1, 1]} : vector<28x28xf32> to vector<24x28xf32>
    %c1 = arith.constant 1 : index
    %c0_5 = arith.constant 0 : index
    %c0_6 = arith.constant 0 : index
    %7 = vector.load %arg2[%c1, %c0_5, %c0_6] : memref<5x28x240xf32, #tpu.memory_space<vmem>>, vector<1x28x240xf32>
    %8 = vector.shape_cast %7 : vector<1x28x240xf32> to vector<28x240xf32>
    %cst_7 = arith.constant dense<0.000000e+00> : vector<24x240xf32>
    %9 = tpu.matmul %6, %8, %cst_7 {dimension_numbers = #tpu.dot_dimension_numbers<[1], [0], [0], [1], [0, 0, 1, 1], [], []>} : vector<24x28xf32>, vector<28x240xf32>, vector<24x240xf32> -> vector<24x240xf32>
    %10 = arith.addf %5, %9 : vector<24x240xf32>
    %11 = vector.extract_strided_slice %1 {offsets = [2, 0], sizes = [24, 28], strides = [1, 1]} : vector<28x28xf32> to vector<24x28xf32>
    %c2 = arith.constant 2 : index
    %c0_8 = arith.constant 0 : index
    %c0_9 = arith.constant 0 : index
    %12 = vector.load %arg2[%c2, %c0_8, %c0_9] : memref<5x28x240xf32, #tpu.memory_space<vmem>>, vector<1x28x240xf32>
    %13 = vector.shape_cast %12 : vector<1x28x240xf32> to vector<28x240xf32>
    %cst_10 = arith.constant dense<0.000000e+00> : vector<24x240xf32>
    %14 = tpu.matmul %11, %13, %cst_10 {dimension_numbers = #tpu.dot_dimension_numbers<[1], [0], [0], [1], [0, 0, 1, 1], [], []>} : vector<24x28xf32>, vector<28x240xf32>, vector<24x240xf32> -> vector<24x240xf32>
    %15 = arith.addf %10, %14 : vector<24x240xf32>
    %16 = vector.extract_strided_slice %1 {offsets = [3, 0], sizes = [24, 28], strides = [1, 1]} : vector<28x28xf32> to vector<24x28xf32>
    %c3 = arith.constant 3 : index
    %c0_11 = arith.constant 0 : index
    %c0_12 = arith.constant 0 : index
    %17 = vector.load %arg2[%c3, %c0_11, %c0_12] : memref<5x28x240xf32, #tpu.memory_space<vmem>>, vector<1x28x240xf32>
    %18 = vector.shape_cast %17 : vector<1x28x240xf32> to vector<28x240xf32>
    %cst_13 = arith.constant dense<0.000000e+00> : vector<24x240xf32>
    %19 = tpu.matmul %16, %18, %cst_13 {dimension_numbers = #tpu.dot_dimension_numbers<[1], [0], [0], [1], [0, 0, 1, 1], [], []>} : vector<24x28xf32>, vector<28x240xf32>, vector<24x240xf32> -> vector<24x240xf32>
    %20 = arith.addf %15, %19 : vector<24x240xf32>
    %21 = vector.extract_strided_slice %1 {offsets = [4, 0], sizes = [24, 28], strides = [1, 1]} : vector<28x28xf32> to vector<24x28xf32>
    %c4 = arith.constant 4 : index
    %c0_14 = arith.constant 0 : index
    %c0_15 = arith.constant 0 : index
    %22 = vector.load %arg2[%c4, %c0_14, %c0_15] : memref<5x28x240xf32, #tpu.memory_space<vmem>>, vector<1x28x240xf32>
    %23 = vector.shape_cast %22 : vector<1x28x240xf32> to vector<28x240xf32>
    %cst_16 = arith.constant dense<0.000000e+00> : vector<24x240xf32>
    %24 = tpu.matmul %21, %23, %cst_16 {dimension_numbers = #tpu.dot_dimension_numbers<[1], [0], [0], [1], [0, 0, 1, 1], [], []>} : vector<24x28xf32>, vector<28x240xf32>, vector<24x240xf32> -> vector<24x240xf32>
    %25 = arith.addf %20, %24 : vector<24x240xf32>
    %c0_17 = arith.constant 0 : index
    %c0_18 = arith.constant 0 : index
    %26 = vector.load %arg3[%c0_17, %c0_18] : memref<1x240xf32, #tpu.memory_space<vmem>>, vector<1x240xf32>
    %27 = vector.broadcast %26 : vector<1x240xf32> to vector<24x240xf32>
    %28 = arith.addf %25, %27 : vector<24x240xf32>
    %cst_19 = arith.constant 0.000000e+00 : f32
    %29 = vector.broadcast %cst_19 : f32 to vector<24x240xf32>
    %30 = arith.maximumf %28, %29 : vector<24x240xf32>
    %c0_20 = arith.constant 0 : index
    %c0_21 = arith.constant 0 : index
    %c0_22 = arith.constant 0 : index
    %31 = vector.load %arg4[%c0_20, %c0_21, %c0_22] : memref<2x12x24xf32, #tpu.memory_space<vmem>>, vector<1x12x24xf32>
    %32 = vector.shape_cast %31 : vector<1x12x24xf32> to vector<12x24xf32>
    %cst_23 = arith.constant dense<0.000000e+00> : vector<12x240xf32>
    %33 = tpu.matmul %32, %30, %cst_23 {dimension_numbers = #tpu.dot_dimension_numbers<[1], [0], [0], [1], [0, 0, 1, 1], [], []>} : vector<12x24xf32>, vector<24x240xf32>, vector<12x240xf32> -> vector<12x240xf32>
    %c1_24 = arith.constant 1 : index
    %c0_25 = arith.constant 0 : index
    %c0_26 = arith.constant 0 : index
    %34 = vector.load %arg4[%c1_24, %c0_25, %c0_26] : memref<2x12x24xf32, #tpu.memory_space<vmem>>, vector<1x12x24xf32>
    %35 = vector.shape_cast %34 : vector<1x12x24xf32> to vector<12x24xf32>
    %cst_27 = arith.constant dense<0.000000e+00> : vector<12x240xf32>
    %36 = tpu.matmul %35, %30, %cst_27 {dimension_numbers = #tpu.dot_dimension_numbers<[1], [0], [0], [1], [0, 0, 1, 1], [], []>} : vector<12x24xf32>, vector<24x240xf32>, vector<12x240xf32> -> vector<12x240xf32>
    %37 = arith.maximumf %33, %36 : vector<12x240xf32>
    %c0_28 = arith.constant 0 : index
    %c0_29 = arith.constant 0 : index
    %c0_30 = arith.constant 0 : index
    %38 = vector.load %arg5[%c0_28, %c0_29, %c0_30] : memref<2x240x120xf32, #tpu.memory_space<vmem>>, vector<1x240x120xf32>
    %39 = vector.shape_cast %38 : vector<1x240x120xf32> to vector<240x120xf32>
    %cst_31 = arith.constant dense<0.000000e+00> : vector<12x120xf32>
    %40 = tpu.matmul %37, %39, %cst_31 {dimension_numbers = #tpu.dot_dimension_numbers<[1], [0], [0], [1], [0, 0, 1, 1], [], []>} : vector<12x240xf32>, vector<240x120xf32>, vector<12x120xf32> -> vector<12x120xf32>
    %c1_32 = arith.constant 1 : index
    %c0_33 = arith.constant 0 : index
    %c0_34 = arith.constant 0 : index
    %41 = vector.load %arg5[%c1_32, %c0_33, %c0_34] : memref<2x240x120xf32, #tpu.memory_space<vmem>>, vector<1x240x120xf32>
    %42 = vector.shape_cast %41 : vector<1x240x120xf32> to vector<240x120xf32>
    %cst_35 = arith.constant dense<0.000000e+00> : vector<12x120xf32>
    %43 = tpu.matmul %37, %42, %cst_35 {dimension_numbers = #tpu.dot_dimension_numbers<[1], [0], [0], [1], [0, 0, 1, 1], [], []>} : vector<12x240xf32>, vector<240x120xf32>, vector<12x120xf32> -> vector<12x120xf32>
    %44 = arith.maximumf %40, %43 : vector<12x120xf32>
    %45 = vector.extract_strided_slice %44 {offsets = [0, 0], sizes = [8, 120], strides = [1, 1]} : vector<12x120xf32> to vector<8x120xf32>
    %c0_36 = arith.constant 0 : index
    %c0_37 = arith.constant 0 : index
    %c0_38 = arith.constant 0 : index
    %46 = vector.load %arg6[%c0_36, %c0_37, %c0_38] : memref<5x120x160xf32, #tpu.memory_space<vmem>>, vector<1x120x160xf32>
    %47 = vector.shape_cast %46 : vector<1x120x160xf32> to vector<120x160xf32>
    %cst_39 = arith.constant dense<0.000000e+00> : vector<8x160xf32>
    %48 = tpu.matmul %45, %47, %cst_39 {dimension_numbers = #tpu.dot_dimension_numbers<[1], [0], [0], [1], [0, 0, 1, 1], [], []>} : vector<8x120xf32>, vector<120x160xf32>, vector<8x160xf32> -> vector<8x160xf32>
    %49 = vector.extract_strided_slice %44 {offsets = [1, 0], sizes = [8, 120], strides = [1, 1]} : vector<12x120xf32> to vector<8x120xf32>
    %c1_40 = arith.constant 1 : index
    %c0_41 = arith.constant 0 : index
    %c0_42 = arith.constant 0 : index
    %50 = vector.load %arg6[%c1_40, %c0_41, %c0_42] : memref<5x120x160xf32, #tpu.memory_space<vmem>>, vector<1x120x160xf32>
    %51 = vector.shape_cast %50 : vector<1x120x160xf32> to vector<120x160xf32>
    %cst_43 = arith.constant dense<0.000000e+00> : vector<8x160xf32>
    %52 = tpu.matmul %49, %51, %cst_43 {dimension_numbers = #tpu.dot_dimension_numbers<[1], [0], [0], [1], [0, 0, 1, 1], [], []>} : vector<8x120xf32>, vector<120x160xf32>, vector<8x160xf32> -> vector<8x160xf32>
    %53 = arith.addf %48, %52 : vector<8x160xf32>
    %54 = vector.extract_strided_slice %44 {offsets = [2, 0], sizes = [8, 120], strides = [1, 1]} : vector<12x120xf32> to vector<8x120xf32>
    %c2_44 = arith.constant 2 : index
    %c0_45 = arith.constant 0 : index
    %c0_46 = arith.constant 0 : index
    %55 = vector.load %arg6[%c2_44, %c0_45, %c0_46] : memref<5x120x160xf32, #tpu.memory_space<vmem>>, vector<1x120x160xf32>
    %56 = vector.shape_cast %55 : vector<1x120x160xf32> to vector<120x160xf32>
    %cst_47 = arith.constant dense<0.000000e+00> : vector<8x160xf32>
    %57 = tpu.matmul %54, %56, %cst_47 {dimension_numbers = #tpu.dot_dimension_numbers<[1], [0], [0], [1], [0, 0, 1, 1], [], []>} : vector<8x120xf32>, vector<120x160xf32>, vector<8x160xf32> -> vector<8x160xf32>
    %58 = arith.addf %53, %57 : vector<8x160xf32>
    %59 = vector.extract_strided_slice %44 {offsets = [3, 0], sizes = [8, 120], strides = [1, 1]} : vector<12x120xf32> to vector<8x120xf32>
    %c3_48 = arith.constant 3 : index
    %c0_49 = arith.constant 0 : index
    %c0_50 = arith.constant 0 : index
    %60 = vector.load %arg6[%c3_48, %c0_49, %c0_50] : memref<5x120x160xf32, #tpu.memory_space<vmem>>, vector<1x120x160xf32>
    %61 = vector.shape_cast %60 : vector<1x120x160xf32> to vector<120x160xf32>
    %cst_51 = arith.constant dense<0.000000e+00> : vector<8x160xf32>
    %62 = tpu.matmul %59, %61, %cst_51 {dimension_numbers = #tpu.dot_dimension_numbers<[1], [0], [0], [1], [0, 0, 1, 1], [], []>} : vector<8x120xf32>, vector<120x160xf32>, vector<8x160xf32> -> vector<8x160xf32>
    %63 = arith.addf %58, %62 : vector<8x160xf32>
    %64 = vector.extract_strided_slice %44 {offsets = [4, 0], sizes = [8, 120], strides = [1, 1]} : vector<12x120xf32> to vector<8x120xf32>
    %c4_52 = arith.constant 4 : index
    %c0_53 = arith.constant 0 : index
    %c0_54 = arith.constant 0 : index
    %65 = vector.load %arg6[%c4_52, %c0_53, %c0_54] : memref<5x120x160xf32, #tpu.memory_space<vmem>>, vector<1x120x160xf32>
    %66 = vector.shape_cast %65 : vector<1x120x160xf32> to vector<120x160xf32>
    %cst_55 = arith.constant dense<0.000000e+00> : vector<8x160xf32>
    %67 = tpu.matmul %64, %66, %cst_55 {dimension_numbers = #tpu.dot_dimension_numbers<[1], [0], [0], [1], [0, 0, 1, 1], [], []>} : vector<8x120xf32>, vector<120x160xf32>, vector<8x160xf32> -> vector<8x160xf32>
    %68 = arith.addf %63, %67 : vector<8x160xf32>
    %c0_56 = arith.constant 0 : index
    %c0_57 = arith.constant 0 : index
    %69 = vector.load %arg7[%c0_56, %c0_57] : memref<1x160xf32, #tpu.memory_space<vmem>>, vector<1x160xf32>
    %70 = vector.broadcast %69 : vector<1x160xf32> to vector<8x160xf32>
    %71 = arith.addf %68, %70 : vector<8x160xf32>
    %cst_58 = arith.constant 0.000000e+00 : f32
    %72 = vector.broadcast %cst_58 : f32 to vector<8x160xf32>
    %73 = arith.maximumf %71, %72 : vector<8x160xf32>
    %c0_59 = arith.constant 0 : index
    %c0_60 = arith.constant 0 : index
    %c0_61 = arith.constant 0 : index
    %74 = vector.load %arg8[%c0_59, %c0_60, %c0_61] : memref<2x4x8xf32, #tpu.memory_space<vmem>>, vector<1x4x8xf32>
    %75 = vector.shape_cast %74 : vector<1x4x8xf32> to vector<4x8xf32>
    %cst_62 = arith.constant dense<0.000000e+00> : vector<4x160xf32>
    %76 = tpu.matmul %75, %73, %cst_62 {dimension_numbers = #tpu.dot_dimension_numbers<[1], [0], [0], [1], [0, 0, 1, 1], [], []>} : vector<4x8xf32>, vector<8x160xf32>, vector<4x160xf32> -> vector<4x160xf32>
    %c1_63 = arith.constant 1 : index
    %c0_64 = arith.constant 0 : index
    %c0_65 = arith.constant 0 : index
    %77 = vector.load %arg8[%c1_63, %c0_64, %c0_65] : memref<2x4x8xf32, #tpu.memory_space<vmem>>, vector<1x4x8xf32>
    %78 = vector.shape_cast %77 : vector<1x4x8xf32> to vector<4x8xf32>
    %cst_66 = arith.constant dense<0.000000e+00> : vector<4x160xf32>
    %79 = tpu.matmul %78, %73, %cst_66 {dimension_numbers = #tpu.dot_dimension_numbers<[1], [0], [0], [1], [0, 0, 1, 1], [], []>} : vector<4x8xf32>, vector<8x160xf32>, vector<4x160xf32> -> vector<4x160xf32>
    %80 = arith.maximumf %76, %79 : vector<4x160xf32>
    %c0_67 = arith.constant 0 : index
    %c0_68 = arith.constant 0 : index
    %c0_69 = arith.constant 0 : index
    %81 = vector.load %arg9[%c0_67, %c0_68, %c0_69] : memref<2x160x80xf32, #tpu.memory_space<vmem>>, vector<1x160x80xf32>
    %82 = vector.shape_cast %81 : vector<1x160x80xf32> to vector<160x80xf32>
    %cst_70 = arith.constant dense<0.000000e+00> : vector<4x80xf32>
    %83 = tpu.matmul %80, %82, %cst_70 {dimension_numbers = #tpu.dot_dimension_numbers<[1], [0], [0], [1], [0, 0, 1, 1], [], []>} : vector<4x160xf32>, vector<160x80xf32>, vector<4x80xf32> -> vector<4x80xf32>
    %c1_71 = arith.constant 1 : index
    %c0_72 = arith.constant 0 : index
    %c0_73 = arith.constant 0 : index
    %84 = vector.load %arg9[%c1_71, %c0_72, %c0_73] : memref<2x160x80xf32, #tpu.memory_space<vmem>>, vector<1x160x80xf32>
    %85 = vector.shape_cast %84 : vector<1x160x80xf32> to vector<160x80xf32>
    %cst_74 = arith.constant dense<0.000000e+00> : vector<4x80xf32>
    %86 = tpu.matmul %80, %85, %cst_74 {dimension_numbers = #tpu.dot_dimension_numbers<[1], [0], [0], [1], [0, 0, 1, 1], [], []>} : vector<4x160xf32>, vector<160x80xf32>, vector<4x80xf32> -> vector<4x80xf32>
    %87 = arith.maximumf %83, %86 : vector<4x80xf32>
    %c0_75 = arith.constant 0 : index
    %c0_76 = arith.constant 0 : index
    %88 = vector.load %arg11[%c0_75, %c0_76] : memref<1x50xf32, #tpu.memory_space<vmem>>, vector<1x50xf32>
    %89 = vector.extract_strided_slice %87 {offsets = [0, 0], sizes = [1, 80], strides = [1, 1]} : vector<4x80xf32> to vector<1x80xf32>
    %c0_77 = arith.constant 0 : index
    %c0_78 = arith.constant 0 : index
    %c0_79 = arith.constant 0 : index
    %90 = vector.load %arg10[%c0_77, %c0_78, %c0_79] : memref<4x80x50xf32, #tpu.memory_space<vmem>>, vector<1x80x50xf32>
    %91 = vector.shape_cast %90 : vector<1x80x50xf32> to vector<80x50xf32>
    %cst_80 = arith.constant dense<0.000000e+00> : vector<1x50xf32>
    %92 = tpu.matmul %89, %91, %cst_80 {dimension_numbers = #tpu.dot_dimension_numbers<[1], [0], [0], [1], [0, 0, 1, 1], [], []>} : vector<1x80xf32>, vector<80x50xf32>, vector<1x50xf32> -> vector<1x50xf32>
    %93 = arith.addf %88, %92 : vector<1x50xf32>
    %94 = vector.extract_strided_slice %87 {offsets = [1, 0], sizes = [1, 80], strides = [1, 1]} : vector<4x80xf32> to vector<1x80xf32>
    %c1_81 = arith.constant 1 : index
    %c0_82 = arith.constant 0 : index
    %c0_83 = arith.constant 0 : index
    %95 = vector.load %arg10[%c1_81, %c0_82, %c0_83] : memref<4x80x50xf32, #tpu.memory_space<vmem>>, vector<1x80x50xf32>
    %96 = vector.shape_cast %95 : vector<1x80x50xf32> to vector<80x50xf32>
    %cst_84 = arith.constant dense<0.000000e+00> : vector<1x50xf32>
    %97 = tpu.matmul %94, %96, %cst_84 {dimension_numbers = #tpu.dot_dimension_numbers<[1], [0], [0], [1], [0, 0, 1, 1], [], []>} : vector<1x80xf32>, vector<80x50xf32>, vector<1x50xf32> -> vector<1x50xf32>
    %98 = arith.addf %93, %97 : vector<1x50xf32>
    %99 = vector.extract_strided_slice %87 {offsets = [2, 0], sizes = [1, 80], strides = [1, 1]} : vector<4x80xf32> to vector<1x80xf32>
    %c2_85 = arith.constant 2 : index
    %c0_86 = arith.constant 0 : index
    %c0_87 = arith.constant 0 : index
    %100 = vector.load %arg10[%c2_85, %c0_86, %c0_87] : memref<4x80x50xf32, #tpu.memory_space<vmem>>, vector<1x80x50xf32>
    %101 = vector.shape_cast %100 : vector<1x80x50xf32> to vector<80x50xf32>
    %cst_88 = arith.constant dense<0.000000e+00> : vector<1x50xf32>
    %102 = tpu.matmul %99, %101, %cst_88 {dimension_numbers = #tpu.dot_dimension_numbers<[1], [0], [0], [1], [0, 0, 1, 1], [], []>} : vector<1x80xf32>, vector<80x50xf32>, vector<1x50xf32> -> vector<1x50xf32>
    %103 = arith.addf %98, %102 : vector<1x50xf32>
    %104 = vector.extract_strided_slice %87 {offsets = [3, 0], sizes = [1, 80], strides = [1, 1]} : vector<4x80xf32> to vector<1x80xf32>
    %c3_89 = arith.constant 3 : index
    %c0_90 = arith.constant 0 : index
    %c0_91 = arith.constant 0 : index
    %105 = vector.load %arg10[%c3_89, %c0_90, %c0_91] : memref<4x80x50xf32, #tpu.memory_space<vmem>>, vector<1x80x50xf32>
    %106 = vector.shape_cast %105 : vector<1x80x50xf32> to vector<80x50xf32>
    %cst_92 = arith.constant dense<0.000000e+00> : vector<1x50xf32>
    %107 = tpu.matmul %104, %106, %cst_92 {dimension_numbers = #tpu.dot_dimension_numbers<[1], [0], [0], [1], [0, 0, 1, 1], [], []>} : vector<1x80xf32>, vector<80x50xf32>, vector<1x50xf32> -> vector<1x50xf32>
    %108 = arith.addf %103, %107 : vector<1x50xf32>
    %cst_93 = arith.constant 0.000000e+00 : f32
    %109 = vector.broadcast %cst_93 : f32 to vector<1x50xf32>
    %110 = arith.maximumf %108, %109 : vector<1x50xf32>
    %c0_94 = arith.constant 0 : index
    %c0_95 = arith.constant 0 : index
    %111 = vector.load %arg12[%c0_94, %c0_95] : memref<50x10xf32, #tpu.memory_space<vmem>>, vector<50x10xf32>
    %cst_96 = arith.constant dense<0.000000e+00> : vector<1x10xf32>
    %112 = tpu.matmul %110, %111, %cst_96 {dimension_numbers = #tpu.dot_dimension_numbers<[1], [0], [0], [1], [0, 0, 1, 1], [], []>} : vector<1x50xf32>, vector<50x10xf32>, vector<1x10xf32> -> vector<1x10xf32>
    %c0_97 = arith.constant 0 : index
    %c0_98 = arith.constant 0 : index
    %113 = vector.load %arg13[%c0_97, %c0_98] : memref<1x10xf32, #tpu.memory_space<vmem>>, vector<1x10xf32>
    %114 = arith.addf %112, %113 : vector<1x10xf32>
    %cst_99 = arith.constant dense<0xFF800000> : vector<1xf32>
    %115 = vector.multi_reduction <maximumf>, %114, %cst_99 [1] : vector<1x10xf32> to vector<1xf32>
    %116 = vector.shape_cast %115 : vector<1xf32> to vector<1x1xf32>
    %117 = vector.broadcast %116 : vector<1x1xf32> to vector<1x10xf32>
    %118 = arith.subf %114, %117 : vector<1x10xf32>
    %119 = math.exp %118 : vector<1x10xf32>
    %cst_100 = arith.constant dense<0.000000e+00> : vector<1xf32>
    %120 = vector.multi_reduction <add>, %119, %cst_100 [1] : vector<1x10xf32> to vector<1xf32>
    %121 = vector.shape_cast %120 : vector<1xf32> to vector<1x1xf32>
    %122 = tpu.reciprocal %121 {approx = true} : vector<1x1xf32> -> vector<1x1xf32>
    %123 = vector.broadcast %122 : vector<1x1xf32> to vector<1x10xf32>
    %124 = arith.mulf %119, %123 : vector<1x10xf32>
    %c0_101 = arith.constant 0 : index
    %c0_102 = arith.constant 0 : index
    %c0_103 = arith.constant 0 : index
    %125 = vector.load %arg14[%c0_101, %c0_102, %c0_103] : memref<1x1x10xf32, #tpu.memory_space<vmem>>, vector<1x1x10xf32>
    %126 = vector.shape_cast %125 : vector<1x1x10xf32> to vector<1x10xf32>
    %127 = vector.shape_cast %124 : vector<1x10xf32> to vector<1x1x10xf32>
    tpu.vector_store %arg14[%c0_101, %c0_102, %c0_103], %127 {strides = array<i32>} : memref<1x1x10xf32, #tpu.memory_space<vmem>>, vector<1x1x10xf32>,
    return
  }
  func.func @transform_0(%arg0: i32) -> (i32, i32, i32) {
    %c0_i32 = arith.constant 0 : i32
    %c0_i32_0 = arith.constant 0 : i32
    %c0_i32_1 = arith.constant 0 : i32
    return %arg0, %c0_i32, %c0_i32_0 : i32, i32, i32
  }
  func.func @transform_1(%arg0: i32) -> (i32, i32, i32) {
    %c0_i32 = arith.constant 0 : i32
    %c0_i32_0 = arith.constant 0 : i32
    %c0_i32_1 = arith.constant 0 : i32
    %c0_i32_2 = arith.constant 0 : i32
    return %c0_i32, %c0_i32_0, %c0_i32_1 : i32, i32, i32
  }
  func.func @transform_2(%arg0: i32) -> (i32, i32) {
    %c0_i32 = arith.constant 0 : i32
    %c0_i32_0 = arith.constant 0 : i32
    %c0_i32_1 = arith.constant 0 : i32
    return %c0_i32, %c0_i32_0 : i32, i32
  }
  func.func @transform_3(%arg0: i32) -> (i32, i32, i32) {
    %c0_i32 = arith.constant 0 : i32
    %c0_i32_0 = arith.constant 0 : i32
    %c0_i32_1 = arith.constant 0 : i32
    %c0_i32_2 = arith.constant 0 : i32
    return %c0_i32, %c0_i32_0, %c0_i32_1 : i32, i32, i32
  }
  func.func @transform_4(%arg0: i32) -> (i32, i32, i32) {
    %c0_i32 = arith.constant 0 : i32
    %c0_i32_0 = arith.constant 0 : i32
    %c0_i32_1 = arith.constant 0 : i32
    %c0_i32_2 = arith.constant 0 : i32
    return %c0_i32, %c0_i32_0, %c0_i32_1 : i32, i32, i32
  }
  func.func @transform_5(%arg0: i32) -> (i32, i32, i32) {
    %c0_i32 = arith.constant 0 : i32
    %c0_i32_0 = arith.constant 0 : i32
    %c0_i32_1 = arith.constant 0 : i32
    %c0_i32_2 = arith.constant 0 : i32
    return %c0_i32, %c0_i32_0, %c0_i32_1 : i32, i32, i32
  }
  func.func @transform_6(%arg0: i32) -> (i32, i32) {
    %c0_i32 = arith.constant 0 : i32
    %c0_i32_0 = arith.constant 0 : i32
    %c0_i32_1 = arith.constant 0 : i32
    return %c0_i32, %c0_i32_0 : i32, i32
  }
  func.func @transform_7(%arg0: i32) -> (i32, i32, i32) {
    %c0_i32 = arith.constant 0 : i32
    %c0_i32_0 = arith.constant 0 : i32
    %c0_i32_1 = arith.constant 0 : i32
    %c0_i32_2 = arith.constant 0 : i32
    return %c0_i32, %c0_i32_0, %c0_i32_1 : i32, i32, i32
  }
  func.func @transform_8(%arg0: i32) -> (i32, i32, i32) {
    %c0_i32 = arith.constant 0 : i32
    %c0_i32_0 = arith.constant 0 : i32
    %c0_i32_1 = arith.constant 0 : i32
    %c0_i32_2 = arith.constant 0 : i32
    return %c0_i32, %c0_i32_0, %c0_i32_1 : i32, i32, i32
  }
  func.func @transform_9(%arg0: i32) -> (i32, i32, i32) {
    %c0_i32 = arith.constant 0 : i32
    %c0_i32_0 = arith.constant 0 : i32
    %c0_i32_1 = arith.constant 0 : i32
    %c0_i32_2 = arith.constant 0 : i32
    return %c0_i32, %c0_i32_0, %c0_i32_1 : i32, i32, i32
  }
  func.func @transform_10(%arg0: i32) -> (i32, i32) {
    %c0_i32 = arith.constant 0 : i32
    %c0_i32_0 = arith.constant 0 : i32
    %c0_i32_1 = arith.constant 0 : i32
    return %c0_i32, %c0_i32_0 : i32, i32
  }
  func.func @transform_11(%arg0: i32) -> (i32, i32) {
    %c0_i32 = arith.constant 0 : i32
    %c0_i32_0 = arith.constant 0 : i32
    %c0_i32_1 = arith.constant 0 : i32
    return %c0_i32, %c0_i32_0 : i32, i32
  }
  func.func @transform_12(%arg0: i32) -> (i32, i32) {
    %c0_i32 = arith.constant 0 : i32
    %c0_i32_0 = arith.constant 0 : i32
    %c0_i32_1 = arith.constant 0 : i32
    return %c0_i32, %c0_i32_0 : i32, i32
  }
  func.func @transform_13(%arg0: i32) -> (i32, i32, i32) {
    %c0_i32 = arith.constant 0 : i32
    %c0_i32_0 = arith.constant 0 : i32
    %c0_i32_1 = arith.constant 0 : i32
    return %arg0, %c0_i32, %c0_i32_0 : i32, i32, i32
  }
}

</mosaic_0001>

<bundles_post_ra>
// kernel: net_forward.1
= control target key start
LH: loop header
LB: loop body
LE: loop exit
PB: predicated region body
PF: predicated region fallthrough
CT: control target
= control target key end

     0   :  { %18 = vsyncpa [#allocation3], 0  ;;  %s5318_s0 = inlined_call_operand.vmem [shape: f32[2,28,28], index: 0, kind: input, shape index: {}]   ;;  %s5319_s1 = inlined_call_operand.vmem [shape: f32[5,28,240], index: 1, kind: input, shape index: {}]   ;;  %s5320_s2 = inlined_call_operand.vmem [shape: f32[1,240], index: 2, kind: input, shape index: {}]   ;;  %s5321_s3 = inlined_call_operand.vmem [shape: f32[2,12,24], index: 3, kind: input, shape index: {}]   ;;  %s5322_s4 = inlined_call_operand.vmem [shape: f32[2,240,120], index: 4, kind: input, shape index: {}]   ;;  %s5323_s5 = inlined_call_operand.vmem [shape: f32[5,120,160], index: 5, kind: input, shape index: {}]   ;;  %s5324_s6 = inlined_call_operand.vmem [shape: f32[1,160], index: 6, kind: input, shape index: {}]   ;;  %s5325_s7 = inlined_call_operand.vmem [shape: f32[2,4,8], index: 7, kind: input, shape index: {}]   ;;  %s5326_s8 = inlined_call_operand.vmem [shape: f32[2,160,80], index: 8, kind: input, shape index: {}]   ;;  %s5327_s9 = inlined_call_operand.vmem [shape: f32[4,80,50], index: 9, kind: input, shape index: {}]   ;;  %s5328_s10 = inlined_call_operand.vmem [shape: f32[1,50], index: 10, kind: input, shape index: {}]   ;;  %s5329_s11 = inlined_call_operand.vmem [shape: f32[50,10], index: 11, kind: input, shape index: {}]   ;;  %s5330_s12 = inlined_call_operand.vmem [shape: f32[1,10], index: 12, kind: input, shape index: {}]   ;;  %s5331_s13 = inlined_call_operand.hbm [shape: f32[2,1,10], index: 13, kind: output, shape index: {}]  }
   0x1   :  { %20 = vsyncpa [#allocation3 + $0x1], 0  ;;  %s3936_s25 = smov 0   ;;  %s3938_s26 = smov 0  }
   0x2   :  { %s3940_s27 = smov 0   ;;  %s3942_s28 = smov 0  }
   0x3 LB: > { %5337 = sst [smem:[#allocation5_spill]] %s3847_s25  ;;  %s3957_s29 = sadd.s32 4294967295, %s3859_s28   ;;  %s3859_s28 = sphi %s3942_s28, %s5348_s28   ;;  %s3855_s27 = sphi %s3940_s27, %s5350_s27   ;;  %s3851_s26 = sphi %s3938_s26, %s5352_s26   ;;  %s3847_s25 = sphi %s3936_s25, %s5351_s25  }
   0x4   : > { %5338 = sst [smem:[#allocation6_spill]] %s3855_s27  ;;  %s2841_s30 = sadd.s32 4294967294, %s3859_s28  }
   0x5   : > { %s3961_s14 = sadd.s32 1, %s3859_s28   ;;  %s311_s15 = sadd.s32 1, %s3855_s27 }
   0x6   : > { %5339 = sst [smem:[#allocation7_spill]] %s3961_s14  ;;  %s308_s16 = ssub.s32 %s3859_s28, %s3961_s14 }
   0x7   : > { %p321_p0 = scmp.ne.s32.totalorder %s3855_s27, %s3851_s26  ;;  %p309_p1 = scmp.eq.s32.totalorder %s308_s16, 0 }
   0x8   : > { %p322_p2 = scmp.eq.s32.totalorder %s3957_s29, 1  ;;  %p327_p3 = scmp.ne.s32.totalorder %s3851_s26, %s3847_s25 }
   0x9   : > { %p328_p4 = scmp.eq.s32.totalorder %s2841_s30, 1  ;;  %p2844_p7 = scmp.ge.s32.totalorder %s3859_s28, 1 }
   0xa   : > { %s3972_s17 = scalar_select %p309_p1, %s3855_s27, %s311_s15  }
   0xb   : > { %p3974_p5 = por %p322_p2, %p321_p0  ;;  %p3978_p6 = por %p328_p4, %p327_p3 }
   0xc   : > { %5340 = sst [smem:[#allocation8_spill]] %s3972_s17  ;;  %p390_p8 = scmp.lt.s32.totalorder %s3859_s28, 3 }
   0xd   : > { %s5342_s19 = scalar_select %p3978_p6, 1, 0 }
   0xe   : > { %p391_p9 = pnand %p2844_p7, %p390_p8 }
   0xf   : > { %5343 = sst [smem:[#allocation9_spill]] %s5342_s19  ;;  %v2848_v0 = vld [vmem:[%s5319_s1 + $0x48] sm:$0xff] (!%p391_p9)  ;;  %v2850_v1 = vld [vmem:[%s5319_s1 + $0x58] sm:$0xff] (!%p391_p9)  ;;  %v2847_v2 = vld [vmem:[%s5319_s1 + $0x40] sm:$0xff] (!%p391_p9)  ;;  %vm478_vm0 = vcmask (!%p391_p9), 1043456   ;;  %v3861_v7 = vmov (!%p391_p9), 0.0  }
  0x10   : > { %394 = sbr.rel (%p391_p9) target bundleno = 2362 (0x93a), region = 72  ;;  %v3295_v3 = vpack.c.bf16 (!%p391_p9), %v2850_v1, %v2848_v0  ;;  %v2849_v4 = vld [vmem:[%s5319_s1 + $0x50] sm:$0xff] (!%p391_p9)  ;;  %v2852_v5 = vld [vmem:[%s5319_s1 + $0x68] sm:$0xff] (!%p391_p9)  ;;  %v2854_v6 = vld [vmem:[%s5319_s1 + $0x78] sm:$0xf] (!%p391_p9)  ;;  %549 = vmatprep.mubr.f32.mxu0 (!%p391_p9), %v3861_v7  ;;  %p433_p10 = scmp.lt.s32.totalorder (!%p391_p9), %s3957_s29, 1  ;;  %1113 = vmatprep.mubr.f32.mxu1 (!%p391_p9), %v3861_v7 }
  0x11   : > { %v3297_v8 = vpack.c.bf16 (!%p391_p9), %v2849_v4, %v2847_v2  ;;  %v3299_v9 = vpack.c.bf16 (!%p391_p9), %v2854_v6, %v2852_v5  ;;  %vm3862_vm1 = vmmov (!%p391_p9), 1   ;;  %v2851_v11 = vld [vmem:[%s5319_s1 + $0x60] sm:$0xff] (!%p391_p9)  ;;  %v2853_v12 = vld [vmem:[%s5319_s1 + $0x70] sm:$0xf] (!%p391_p9)  ;;  %v443_v13 = vld [vmem:[%s5319_s1 + $0x8] sm:$0xff] (!%p391_p9)  ;;  %vm463_vm3 = vcmask (!%p391_p9), 1046528  }
  0x12   : > { %vm4006_vm2 = vmpackc.low (!%p391_p9), %vm478_vm0, %vm3862_vm1  ;;  %3296 = vmatprep.subr.bf16.mxu0 (!%p391_p9), %v3295_v3  ;;  %v445_v14 = vld [vmem:[%s5319_s1 + $0x18] sm:$0xff] (!%p391_p9)  ;;  %v3302_v15 = vpack.c.bf16 (!%p391_p9), %v2853_v12, %v2851_v11  ;;  %v442_v17 = vld [vmem:[%s5319_s1] sm:$0xff] (!%p391_p9)  ;;  %vm471_vm4 = vcmask (!%p391_p9), 228352   ;;  %vm672_vm5 = vcmask (!%p391_p9), 1045504   ;;  %vm790_vm6 = vcmask (!%p391_p9), 1044480  }
  0x13   : > { %3298 = vmatpush1.bf16.msra.mxu0 (!%p391_p9), %v3297_v8  ;;  %v3305_v16 = vpack.c.bf16 (!%p391_p9), %v445_v14, %v443_v13  ;;  %v444_v18 = vld [vmem:[%s5319_s1 + $0x10] sm:$0xff] (!%p391_p9)  ;;  %v447_v19 = vld [vmem:[%s5319_s1 + $0x28] sm:$0xff] (!%p391_p9)  ;;  %v449_v20 = vld [vmem:[%s5319_s1 + $0x38] sm:$0xf] (!%p391_p9)  ;;  %vm1042_vm7 = vcmask (!%p391_p9), 195584   ;;  %vm1246_vm8 = vcmask (!%p391_p9), 916480  }
  0x14   : > { %3301 = vmatprep.subr.msk.bf16.mxu0 (!%p391_p9), %vm4006_vm2, %v3299_v9  ;;  %v3307_v27 = vpack.c.bf16 (!%p391_p9), %v444_v18, %v442_v17  ;;  %v3309_v29 = vpack.c.bf16 (!%p391_p9), %v449_v20, %v447_v19  ;;  %v446_v30 = vld [vmem:[%s5319_s1 + $0x20] sm:$0xff] (!%p391_p9)  ;;  %v448_v31 = vld [vmem:[%s5319_s1 + $0x30] sm:$0xf] (!%p391_p9)  ;;  %v2866_v33 = vld [vmem:[%s5319_s1 + $0x88] sm:$0xff] (!%p391_p9)  ;;  %vm1502_vm9 = vcmask (!%p391_p9), 982016   ;;  %vm1993_vm10 = vcmask (!%p391_p9), 64512  }
  0x15   : > { %v2868_v34 = vld [vmem:[%s5319_s1 + $0x98] sm:$0xff] (!%p391_p9)  ;;  %v3312_v37 = vpack.c.bf16 (!%p391_p9), %v448_v31, %v446_v30  ;;  %v2865_v40 = vld [vmem:[%s5319_s1 + $0x80] sm:$0xff] (!%p391_p9)  ;;  %v2867_v41 = vld [vmem:[%s5319_s1 + $0x90] sm:$0xff] (!%p391_p9)  ;;  %vm2166_vm11 = vcmask (!%p391_p9), 261120   ;;  %vm3864_vm12 = vmmov (!%p391_p9), 0   ;;  %vm2343_vm13 = vcmask (!%p391_p9), 654336  }
  0x16   : > { %v3315_v38 = vpack.c.bf16 (!%p391_p9), %v2868_v34, %v2866_v33  ;;  %v2870_v42 = vld [vmem:[%s5319_s1 + $0xa8] sm:$0xff] (!%p391_p9)  ;;  %v2872_v43 = vld [vmem:[%s5319_s1 + $0xb8] sm:$0xf] (!%p391_p9)  ;;  %v3317_v44 = vpack.c.bf16 (!%p391_p9), %v2867_v41, %v2865_v40  ;;  %v2869_v46 = vld [vmem:[%s5319_s1 + $0xa0] sm:$0xff] (!%p391_p9)  ;;  %vm2686_vm14 = vcmask (!%p391_p9), 1041408   ;;  %vm2682_vm15 = vcmask (!%p391_p9), 408576  }
  0x17   : > { %s434_s24 = scalar_select %p433_p10, %s3957_s29, 1  ;;  %3304 = vmatpush1.bf16.msk.msra.mxu0 %vm4006_vm2, %v3302_v15  ;;  %v3319_v45 = vpack.c.bf16 %v2872_v43, %v2870_v42  ;;  %v2871_v47 = vld [vmem:[%s5319_s1 + $0xb0] sm:$0xf]  ;;  %v2879_v48 = vld [vmem:[%s5319_s1 + $0xc8] sm:$0xff]  ;;  %v2881_v49 = vld [vmem:[%s5319_s1 + $0xd8] sm:$0xff] }
  0x18   : > { %3306 = vmatprep.subr.bf16.mxu0 %v3305_v16  ;;  %v3322_v50 = vpack.c.bf16 %v2871_v47, %v2869_v46  ;;  %v3325_v51 = vpack.c.bf16 %v2881_v49, %v2879_v48  ;;  %v2878_v54 = vld [vmem:[%s5319_s1 + $0xc0] sm:$0xff]  ;;  %v2880_v55 = vld [vmem:[%s5319_s1 + $0xd0] sm:$0xff]  ;;  %v2883_v56 = vld [vmem:[%s5319_s1 + $0xe8] sm:$0xff] }
  0x19   : > { %s3133_s21 = sshll.u32 %s434_s24, 5  ;;  %v2885_v57 = vld [vmem:[%s5319_s1 + $0xf8] sm:$0xf]  ;;  %v3327_v60 = vpack.c.bf16 %v2880_v55, %v2878_v54  ;;  %v2882_v62 = vld [vmem:[%s5319_s1 + $0xe0] sm:$0xff]  ;;  %v2884_v63 = vld [vmem:[%s5319_s1 + $0xf0] sm:$0xf] }
  0x1a   : > { %s437_s16 = scalar_lea.vmem %s5318_s0, %s3133_s21  ;;  %v3329_v61 = vpack.c.bf16 %v2885_v57, %v2883_v56  ;;  %v2892_v0 = vld [vmem:[%s5319_s1 + $0x108] sm:$0xff]  ;;  %v2894_v1 = vld [vmem:[%s5319_s1 + $0x118] sm:$0xff]  ;;  %v3332_v4 = vpack.c.bf16 %v2884_v63, %v2882_v62  ;;  %v2891_v11 = vld [vmem:[%s5319_s1 + $0x100] sm:$0xff]  ;;  %s431_s24 = sand.u32 1, %s3851_s26  }
  0x1b   : > { %v4040_v21 = vld [vmem:[%s437_s16] sm:$0xff]  ;;  %v4042_v22 = vld [vmem:[%s437_s16 + $0x8] sm:$0xff]  ;;  %v4044_v23 = vld [vmem:[%s437_s16 + $0x10] sm:$0xff]  ;;  %v3335_v5 = vpack.c.bf16 %v2894_v1, %v2892_v0  ;;  %s3130_s21 = sshll.u32 %s3957_s29, 4  ;;  %s432_s27 = scalar_lea.vmem [#allocation2], %s431_s24 }
  0x1c   : > { %v464_v24 = vrot.slane %v4040_v21, 1  ;;  %v465_v25 = vrot.slane %v4042_v22, 1  ;;  %v467_v26 = vrot.slane %v4044_v23, 1  ;;  %v4051_v28 = vld [vmem:[%s437_s16 + $0x18] sm:$0xf]  ;;  %v673_v52 = vrot.slane %v4040_v21, 2  ;;  %s5275_s30 = scalar_lea.hbm %s5331_s13, %s3130_s21 }
  0x1d   : > { %v469_v36 = vrot.slane %v4051_v28, 1  ;;  %v674_v53 = vrot.slane %v4042_v22, 2  ;;  %v676_v59 = vrot.slane %v4044_v23, 2  ;;  %v678_v3 = vrot.slane %v4051_v28, 2  ;;  %v2893_v12 = vld [vmem:[%s5319_s1 + $0x110] sm:$0xff]  ;;  %v2896_v13 = vld [vmem:[%s5319_s1 + $0x128] sm:$0xff] }
  0x1e   : > { %v466_v32 = vsel %vm463_vm3, %v464_v24, %v465_v25  ;;  %v468_v35 = vsel %vm463_vm3, %v465_v25, %v467_v26  ;;  %v791_v8 = vrot.slane %v4040_v21, 3  ;;  %v792_v9 = vrot.slane %v4042_v22, 3  ;;  %v2898_v14 = vld [vmem:[%s5319_s1 + $0x138] sm:$0xf]  ;;  %v2895_v19 = vld [vmem:[%s5319_s1 + $0x120] sm:$0xff]  ;;  %v2919_v42 = vld [vmem:[%s5322_s4 + $0x128] sm:$0xff] }
  0x1f   : > { %2857 = vmatmul.mubr.msk.f32.vlgmr.msra.gmra.mrb[0].mxu0 %vm471_vm4, %v466_v32  ;;  %v470_v39 = vsel %vm463_vm3, %v467_v26, %v469_v36  ;;  %v675_v58 = vsel %vm672_vm5, %v673_v52, %v674_v53  ;;  %v677_v2 = vsel %vm672_vm5, %v674_v53, %v676_v59  ;;  %v679_v6 = vsel %vm672_vm5, %v676_v59, %v678_v3  ;;  %v2897_v20 = vld [vmem:[%s5319_s1 + $0x130] sm:$0xf]  ;;  %v2913_v34 = vld [vmem:[%s5322_s4 + $0xf8] sm:$0xff]  ;;  %v2915_v36 = vld [vmem:[%s5322_s4 + $0x108] sm:$0xff]  ;;  %s2786_s17 = sshll.u32 %s432_s27, 4  ;;  %s2774_s15 = scalar_lea.sflag [#allocation3], %s431_s24  ;;  %s5277_s17 = int_to_ptr.vmem [resolvable:$true] %s2786_s17 }
  0x20   : > { %555 = vmatprep.mubr.f32.mxu0 %v3861_v7  ;;  %3308 = vmatpush1.bf16.msra.mxu0 %v3307_v27  ;;  %v793_v15 = vsel %vm790_vm6, %v791_v8, %v792_v9  ;;  %v794_v16 = vrot.slane %v4044_v23, 3  ;;  %v3337_v17 = vpack.c.bf16 %v2893_v12, %v2891_v11  ;;  %v3339_v18 = vpack.c.bf16 %v2898_v14, %v2896_v13  ;;  %v2918_v41 = vld [vmem:[%s5322_s4 + $0x120] sm:$0xff]  ;;  %v2923_v48 = vld [vmem:[%s5322_s4 + $0x148] sm:$0xff]  ;;  %v2928_v56 = vld [vmem:[%s5322_s4 + $0x170] sm:$0xff]  ;;  %s3797_s16 = scalar_lea.vmem %s5277_s17, 16  ;;  %s3865_s29 = smov [#allocation2]  }
  0x21   : > { %3311 = vmatprep.subr.msk.bf16.mxu0 %vm4006_vm2, %v3309_v29  ;;  %v796_v25 = vrot.slane %v4051_v28, 3  ;;  %v3342_v26 = vpack.c.bf16 %v2897_v20, %v2895_v19  ;;  %v908_v29 = vrot.slane %v4040_v21, 4  ;;  %v909_v30 = vrot.slane %v4042_v22, 4  ;;  %v2922_v47 = vld [vmem:[%s5322_s4 + $0x140] sm:$0xff]  ;;  %v2927_v54 = vld [vmem:[%s5322_s4 + $0x168] sm:$0xff]  ;;  %v2929_v57 = vld [vmem:[%s5322_s4 + $0x178] sm:$0xff]  ;;  %p3798_p11 = scmp.ne.s32.totalorder %s5277_s17, %s3797_s16 }
  0x22   : > { %v795_v24 = vsel %vm790_vm6, %v792_v9, %v794_v16  ;;  %v911_v32 = vrot.slane %v4044_v23, 4  ;;  %v913_v10 = vrot.slane %v4051_v28, 4  ;;  %v3408_v43 = vpack.c.bf16 %v2919_v42, %v2918_v41  ;;  %v2926_v53 = vld [vmem:[%s5322_s4 + $0x160] sm:$0xff]  ;;  %v2932_v62 = vld [vmem:[%s5322_s4 + $0x190] sm:$0xff]  ;;  %v2933_v63 = vld [vmem:[%s5322_s4 + $0x198] sm:$0xff]  ;;  %s3801_s20 = sshll.u32 %s3865_s29, 4  ;;  %s3802_s20 = int_to_ptr.vmem [resolvable:$false] %s3801_s20 }
  0x23   : > { %2858 = vmatmul.mubr.msk.f32.gmra.mrb[2].mxu0 %vm471_vm4, %v468_v35  ;;  %v797_v27 = vsel %vm790_vm6, %v794_v16, %v796_v25  ;;  %v910_v31 = vsel %vm478_vm0, %v908_v29, %v909_v30  ;;  %v2914_v35 = vld [vmem:[%s5322_s4 + $0x100] sm:$0xff]  ;;  %v3414_v49 = vpack.c.bf16 %v2923_v48, %v2922_v47  ;;  %v3420_v55 = vpack.c.bf16 %v2927_v54, %v2926_v53  ;;  %v2907_v41 = vld [vmem:[%s5321_s3 + $0x18] sm:$0xf]  ;;  %p3799_p12 = pnand %p3798_p11, %p3974_p5  ;;  %s3803_s25 = scalar_lea.vmem %s3802_s20, 32 }
  0x24   : > { %561 = vmatprep.mubr.f32.mxu0 %v3861_v7  ;;  %3314 = vmatpush1.bf16.msk.msra.mxu0 %vm4006_vm2, %v3312_v37  ;;  %v912_v33 = vsel %vm478_vm0, %v909_v30, %v911_v32  ;;  %v3402_v37 = vpack.c.bf16 %v2915_v36, %v2914_v35  ;;  %v2930_v59 = vld [vmem:[%s5322_s4 + $0x180] sm:$0xff]  ;;  %v3429_v0 = vpack.c.bf16 %v2933_v63, %v2932_v62  ;;  %v1217_v36 = vld [vmem:[%s5322_s4 + $0x8] sm:$0xff]  ;;  %v1223_v47 = vld [vmem:[%s5322_s4 + $0x38] sm:$0xff]  ;;  %p3804_p0 = scmp.lt.s32.totalorder %s5277_s17, %s3802_s20  ;;  %p3805_p1 = scmp.lt.s32.totalorder %s3803_s25, %s3797_s16 }
  0x25   : > { %3316 = vmatprep.subr.bf16.mxu0 %v3315_v38  ;;  %v2916_v38 = vld [vmem:[%s5322_s4 + $0x110] sm:$0xff]  ;;  %v2934_v1 = vld [vmem:[%s5322_s4 + $0x1a0] sm:$0xff]  ;;  %v1227_v53 = vld [vmem:[%s5322_s4 + $0x58] sm:$0xff]  ;;  %p3800_p13 = pneg %p3799_p12 }
  0x26   : > { %v1016_v8 = vld [vmem:[%s5320_s2] sm:$0x3]  ;;  %v1233_v62 = vld [vmem:[%s5322_s4 + $0x88] sm:$0xff]  ;;  %p3806_p2 = por %p3805_p1, %p3804_p0 }
  0x27   : > { %2859 = vmatmul.mubr.msk.f32.gmra.mrb[4].mxu0 %vm471_vm4, %v470_v39  ;;  %v2917_v39 = vld [vmem:[%s5322_s4 + $0x118] sm:$0xff]  ;;  %v1216_v35 = vld [vmem:[%s5322_s4] sm:$0xff] }
  0x28   : > { %644 = vmatprep.mubr.f32.mxu0 %v3861_v7  ;;  %v3405_v40 = vpack.c.bf16 %v2917_v39, %v2916_v38  ;;  %v3354_v38 = vpack.c.bf16 %v1217_v36, %v1216_v35  ;;  %v1218_v39 = vld [vmem:[%s5322_s4 + $0x10] sm:$0xff]  ;;  %p3807_p3 = pnand %p3806_p2, %p3800_p13 }
  0x2b   : > { %2862 = vmatmul.mubr.msk.f32.vlgmr.msra.gmra.mrb[0].mxu0 %vm471_vm4, %v4040_v21  ;;  %v914_v21 = vsel %vm478_vm0, %v911_v32, %v913_v10 }
  0x2c   : > { %650 = vmatprep.mubr.f32.mxu0 %v3861_v7  ;;  %3318 = vmatpush1.bf16.msra.mxu0 %v3317_v44  ;;  %v2920_v44 = vld [vmem:[%s5322_s4 + $0x130] sm:$0xff] }
  0x2d   : > { %3321 = vmatprep.subr.msk.bf16.mxu0 %vm4006_vm2, %v3319_v45  ;;  %v2921_v45 = vld [vmem:[%s5322_s4 + $0x138] sm:$0xff] }
  0x2e   : > { %v3411_v46 = vpack.c.bf16 %v2921_v45, %v2920_v44  ;;  %v1221_v44 = vld [vmem:[%s5322_s4 + $0x28] sm:$0xff] }
  0x2f   : > { %2863 = vmatmul.mubr.msk.f32.gmra.mrb[2].mxu0 %vm471_vm4, %v4042_v22  ;;  %v2912_v22 = vld [vmem:[%s5322_s4 + $0xf0] sm:$0xff] }
  0x30   : > { %656 = vmatprep.mubr.f32.mxu0 %v3861_v7  ;;  %3324 = vmatpush1.bf16.msk.msra.mxu0 %vm4006_vm2, %v3322_v50  ;;  %v3399_v28 = vpack.c.bf16 %v2913_v34, %v2912_v22  ;;  %v2924_v50 = vld [vmem:[%s5322_s4 + $0x150] sm:$0xff]  ;;  %v1040_v34 = vld [vmem:[%s5321_s3] sm:$0xff] }
  0x31   : > { %3326 = vmatprep.subr.bf16.mxu0 %v3325_v51  ;;  %v2925_v51 = vld [vmem:[%s5322_s4 + $0x158] sm:$0xff] }
  0x32   : > { %v3417_v52 = vpack.c.bf16 %v2925_v51, %v2924_v50  ;;  %v1225_v50 = vld [vmem:[%s5322_s4 + $0x48] sm:$0xff] }
  0x33   : > { %2864 = vmatmul.mubr.msk.f32.gmra.mrb[4].mxu0 %vm471_vm4, %v4044_v23  ;;  %v3863_v23 = vmov 0.0|0.0  }
  0x34   : > { %756 = vmatprep.mubr.f32.mxu0 %v3861_v7 }
  0x37   : > { %2875 = vmatmul.mubr.msk.f32.vlgmr.msra.gmra.mrb[0].mxu0 %vm471_vm4, %v675_v58  ;;  %v3423_v58 = vpack.c.bf16 %v2929_v57, %v2928_v56  ;;  %v1229_v56 = vld [vmem:[%s5322_s4 + $0x68] sm:$0xff] }
  0x38   : > { %762 = vmatprep.mubr.f32.mxu0 %v3861_v7  ;;  %3328 = vmatpush1.bf16.msra.mxu0 %v3327_v60  ;;  %v2931_v60 = vld [vmem:[%s5322_s4 + $0x188] sm:$0xff] }
  0x39   : > { %3331 = vmatprep.subr.msk.bf16.mxu0 %vm4006_vm2, %v3329_v61  ;;  %v3426_v61 = vpack.c.bf16 %v2931_v60, %v2930_v59  ;;  %v1231_v59 = vld [vmem:[%s5322_s4 + $0x78] sm:$0xff] }
  0x3b   : > { %2876 = vmatmul.mubr.msk.f32.gmra.mrb[2].mxu0 %vm471_vm4, %v677_v2  ;;  %v2935_v2 = vld [vmem:[%s5322_s4 + $0x1a8] sm:$0xff] }
  0x3c   : > { %768 = vmatprep.mubr.f32.mxu0 %v3861_v7  ;;  %3334 = vmatpush1.bf16.msk.msra.mxu0 %vm4006_vm2, %v3332_v4  ;;  %v3432_v3 = vpack.c.bf16 %v2935_v2, %v2934_v1  ;;  %v1018_v4 = vlaneseq  ;;  %v1235_v1 = vld [vmem:[%s5322_s4 + $0x98] sm:$0xff] }
  0x3d   : > { %3336 = vmatprep.subr.bf16.mxu0 %v3335_v5 }
  0x3e   : > { %v4289_v5 = vshrl.u32 %v1018_v4, 7  ;;  %v1237_v4 = vld [vmem:[%s5322_s4 + $0xa8] sm:$0xff] }
  0x3f   : > { %2877 = vmatmul.mubr.msk.f32.gmra.mrb[4].mxu0 %vm471_vm4, %v679_v6 }
  0x40   : > { %874 = vmatprep.mubr.f32.mxu0 %v3861_v7  ;;  %v1020_v6 = vsub.s32 0, %v4289_v5  ;;  %v1024_v9 = vsub.s32 1, %v4289_v5  ;;  %v3070_v5 = vld [vmem:[%s5325_s7 + $0x4] sm:$0xf] }
  0x42   : > { %v1021_v11 = vrot.slane %v1016_v8, %v1020_v6  ;;  %v1025_v13 = vrot.slane %v1016_v8, %v1024_v9 }
  0x43   : > { %2888 = vmatmul.mubr.msk.f32.vlgmr.msra.gmra.mrb[0].mxu0 %vm471_vm4, %v793_v15 }
  0x44   : > { %880 = vmatprep.mubr.f32.mxu0 %v3861_v7  ;;  %3338 = vmatpush1.bf16.msra.mxu0 %v3337_v17 }
  0x45   : > { %3341 = vmatprep.subr.msk.bf16.mxu0 %vm4006_vm2, %v3339_v18 }
  0x47   : > { %2889 = vmatmul.mubr.msk.f32.gmra.mrb[2].mxu0 %vm471_vm4, %v795_v24 }
  0x48   : > { %886 = vmatprep.mubr.f32.mxu0 %v3861_v7  ;;  %3344 = vmatpush1.bf16.msk.msra.mxu0 %vm4006_vm2, %v3342_v26 }
  0x49   : > { %3398 = vmatprep.subr.bf16.mxu0 %v3863_v23 }
  0x4b   : > { %2890 = vmatmul.mubr.msk.f32.gmra.mrb[4].mxu0 %vm471_vm4, %v797_v27 }
  0x4c   : > { %991 = vmatprep.mubr.f32.mxu0 %v3861_v7 }
  0x4f   : > { %2901 = vmatmul.mubr.msk.f32.vlgmr.msra.gmra.mrb[0].mxu0 %vm471_vm4, %v910_v31 }
  0x50   : > { %997 = vmatprep.mubr.f32.mxu0 %v3861_v7  ;;  %3400 = vmatpush1.bf16.msra.mxu0 %v3399_v28  ;;  %v1041_v28 = vld [vmem:[%s5321_s3 + $0x8] sm:$0xf] }
  0x51   : > { %3401 = vmatprep.subr.bf16.mxu0 %v3863_v23 }
  0x53   : > { %2902 = vmatmul.mubr.msk.f32.gmra.mrb[2].mxu0 %vm471_vm4, %v912_v33 }
  0x54   : > { %1003 = vmatprep.mubr.f32.mxu0 %v3861_v7  ;;  %3403 = vmatpush1.bf16.msra.mxu0 %v3402_v37  ;;  %v2906_v37 = vld [vmem:[%s5321_s3 + $0x10] sm:$0xff] }
  0x55   : > { %3404 = vmatprep.subr.bf16.mxu0 %v3863_v23 }
  0x57   : > { %2903 = vmatmul.mubr.msk.f32.gmra.mrb[4].mxu0 %vm471_vm4, %v914_v21 }
  0x58   : > { %3406 = vmatpush1.bf16.msra.mxu0 %v3405_v40  ;;  %v1219_v40 = vld [vmem:[%s5322_s4 + $0x18] sm:$0xff] }
  0x59   : > { %3407 = vmatprep.subr.bf16.mxu0 %v3863_v23  ;;  %v3357_v42 = vpack.c.bf16 %v1219_v40, %v1218_v39  ;;  %v2944_v39 = vld [vmem:[%s5323_s5 + $0xf0] sm:$0xff]  ;;  %v2946_v40 = vld [vmem:[%s5323_s5 + $0x100] sm:$0xff] }
  0x5c   : > { %3409 = vmatpush1.bf16.msra.mxu0 %v3408_v43  ;;  %v1220_v43 = vld [vmem:[%s5322_s4 + $0x20] sm:$0xff] }
  0x5d   : > { %3410 = vmatprep.subr.bf16.mxu0 %v3863_v23  ;;  %v3360_v45 = vpack.c.bf16 %v1221_v44, %v1220_v43  ;;  %v2951_v43 = vld [vmem:[%s5323_s5 + $0x128] sm:$0xff] }
  0x60   : > { %3412 = vmatpush1.bf16.msra.mxu0 %v3411_v46  ;;  %v1222_v46 = vld [vmem:[%s5322_s4 + $0x30] sm:$0xff] }
  0x61   : > { %3413 = vmatprep.subr.bf16.mxu0 %v3863_v23  ;;  %v3363_v48 = vpack.c.bf16 %v1223_v47, %v1222_v46  ;;  %v3445_v47 = vpack.c.bf16 %v2946_v40, %v2944_v39 }
  0x64   : > { %3415 = vmatpush1.bf16.msra.mxu0 %v3414_v49  ;;  %v1224_v49 = vld [vmem:[%s5322_s4 + $0x40] sm:$0xff] }
  0x65   : > { %3416 = vmatprep.subr.bf16.mxu0 %v3863_v23  ;;  %v3366_v51 = vpack.c.bf16 %v1225_v50, %v1224_v49  ;;  %v2948_v49 = vld [vmem:[%s5323_s5 + $0x110] sm:$0xff]  ;;  %v2950_v50 = vld [vmem:[%s5323_s5 + $0x120] sm:$0xff] }
  0x68   : > { %3418 = vmatpush1.bf16.msra.mxu0 %v3417_v52  ;;  %v1226_v52 = vld [vmem:[%s5322_s4 + $0x50] sm:$0xff] }
  0x69   : > { %3419 = vmatprep.subr.bf16.mxu0 %v3863_v23  ;;  %v3369_v54 = vpack.c.bf16 %v1227_v53, %v1226_v52  ;;  %v2953_v52 = vld [vmem:[%s5323_s5 + $0x138] sm:$0xff]  ;;  %v2955_v53 = vld [vmem:[%s5323_s5 + $0x148] sm:$0xff] }
  0x6c   : > { %3421 = vmatpush1.bf16.msra.mxu0 %v3420_v55  ;;  %v1228_v55 = vld [vmem:[%s5322_s4 + $0x60] sm:$0xff] }
  0x6d   : > { %3422 = vmatprep.subr.bf16.mxu0 %v3863_v23  ;;  %v3372_v57 = vpack.c.bf16 %v1229_v56, %v1228_v55 }
  0x70   : > { %3424 = vmatpush1.bf16.msra.mxu0 %v3423_v58  ;;  %v1230_v58 = vld [vmem:[%s5322_s4 + $0x70] sm:$0xff] }
  0x71   : > { %3425 = vmatprep.subr.bf16.mxu0 %v3863_v23  ;;  %v3375_v60 = vpack.c.bf16 %v1231_v59, %v1230_v58  ;;  %v3451_v58 = vpack.c.bf16 %v2955_v53, %v2953_v52  ;;  %v2952_v59 = vld [vmem:[%s5323_s5 + $0x130] sm:$0xff] }
  0x74   : > { %3427 = vmatpush1.bf16.msra.mxu0 %v3426_v61  ;;  %v1232_v61 = vld [vmem:[%s5322_s4 + $0x80] sm:$0xff] }
  0x75   : > { %3428 = vmatprep.subr.bf16.mxu0 %v3863_v23  ;;  %v3378_v63 = vpack.c.bf16 %v1233_v62, %v1232_v61  ;;  %v2957_v61 = vld [vmem:[%s5323_s5 + $0x158] sm:$0xff]  ;;  %v2959_v62 = vld [vmem:[%s5323_s5 + $0x168] sm:$0xff] }
  0x78   : > { %3430 = vmatpush1.bf16.msra.mxu0 %v3429_v0  ;;  %v1234_v0 = vld [vmem:[%s5322_s4 + $0x90] sm:$0xff] }
  0x79   : > { %3431 = vmatprep.subr.bf16.mxu0 %v3863_v23  ;;  %v3381_v2 = vpack.c.bf16 %v1235_v1, %v1234_v0  ;;  %v3455_v0 = vpack.c.bf16 %v2959_v62, %v2957_v61  ;;  %v2956_v1 = vld [vmem:[%s5323_s5 + $0x150] sm:$0xff] }
  0x7c   : > { %3433 = vmatpush1.bf16.msra.mxu0 %v3432_v3  ;;  %v1236_v3 = vld [vmem:[%s5322_s4 + $0xa0] sm:$0xff] }
  0x7d   : > { %3434 = vmatprep.subr.bf16.mxu0 %v3863_v23  ;;  %v3384_v8 = vpack.c.bf16 %v1237_v4, %v1236_v3  ;;  %v2961_v3 = vld [vmem:[%s5323_s5 + $0x178] sm:$0xff]  ;;  %v2963_v4 = vld [vmem:[%s5323_s5 + $0x188] sm:$0xff] }
 0x122   : > { %v993_v12 = vpop.f32.mrb[0].mxu0 }
 0x123   : > { %v995_v14 = vpop.f32.mrb[1].mxu0  ;;  %v1028_v15 = vadd.f32 %v1021_v11, %v993_v12  ;;  %v1239_v12 = vld [vmem:[%s5322_s4 + $0xb8] sm:$0xff] }
 0x124   : > { %v1029_v16 = vadd.f32 %v1025_v13, %v995_v14  ;;  %v1240_v14 = vld [vmem:[%s5322_s4 + $0xc0] sm:$0xff] }
 0x125   : > { %v1034_v24 = vmax.f32 %v1028_v15, 0.0  ;;  %v1241_v15 = vld [vmem:[%s5322_s4 + $0xc8] sm:$0xff] }
 0x126   : > { %v999_v17 = vpop.f32.mrb[2].mxu0  ;;  %v1035_v26 = vmax.f32 %v1029_v16, 0.0  ;;  %v2936_v16 = vld [vmem:[%s5322_s4 + $0x1b0] sm:$0xff] }
 0x127   : > { %v1030_v18 = vadd.f32 %v1021_v11, %v999_v17  ;;  %v1001_v19 = vpop.f32.mrb[3].mxu0  ;;  %v3390_v17 = vpack.c.bf16 %v1241_v15, %v1240_v14  ;;  %v2965_v14 = vld [vmem:[%s5323_s5 + $0x198] sm:$0xff]  ;;  %v2967_v15 = vld [vmem:[%s5323_s5 + $0x1a8] sm:$0xff] }
 0x128   : > { %v1031_v20 = vadd.f32 %v1025_v13, %v1001_v19 }
 0x129   : > { %v1036_v25 = vmax.f32 %v1030_v18, 0.0  ;;  %v2937_v18 = vld [vmem:[%s5322_s4 + $0x1b8] sm:$0xff] }
 0x12a   : > { %v1037_v27 = vmax.f32 %v1031_v20, 0.0  ;;  %v1005_v29 = vpop.f32.mrb[4].mxu0  ;;  %v3435_v19 = vpack.c.bf16 %v2937_v18, %v2936_v16  ;;  %v1242_v20 = vld [vmem:[%s5322_s4 + $0xd0] sm:$0xff] }
 0x12b   : > { %v1007_v30 = vpop.f32.mrb[5].mxu0  ;;  %v3347_v31 = vpack.c.bf16 %v1036_v25, %v1034_v24  ;;  %v1032_v10 = vadd.f32 %v1021_v11, %v1005_v29  ;;  %v1238_v11 = vld [vmem:[%s5322_s4 + $0xb0] sm:$0xff]  ;;  %v1243_v24 = vld [vmem:[%s5322_s4 + $0xd8] sm:$0xff]  ;;  %v2938_v25 = vld [vmem:[%s5322_s4 + $0x1c0] sm:$0xff] }
 0x12c   : > { %v1033_v32 = vadd.f32 %v1025_v13, %v1007_v30  ;;  %v3345_v33 = vpack.c.bf16 %v1037_v27, %v1035_v26  ;;  %v3387_v13 = vpack.c.bf16 %v1239_v12, %v1238_v11  ;;  %3436 = vmatpush1.bf16.msra.mxu0 %v3435_v19  ;;  %v3393_v26 = vpack.c.bf16 %v1243_v24, %v1242_v20  ;;  %v2939_v27 = vld [vmem:[%s5322_s4 + $0x1c8] sm:$0xff]  ;;  %v1244_v30 = vld [vmem:[%s5322_s4 + $0xe0] sm:$0xff]  ;;  %v2960_v12 = vld [vmem:[%s5323_s5 + $0x170] sm:$0xff] }
 0x12d   : > { %v1038_v22 = vmax.f32 %v1032_v10, 0.0  ;;  %3437 = vmatprep.subr.bf16.mxu0 %v3863_v23  ;;  %v3438_v29 = vpack.c.bf16 %v2939_v27, %v2938_v25  ;;  %v2941_v10 = vld [vmem:[%s5322_s4 + $0x1d8] sm:$0xff]  ;;  %v3459_v11 = vpack.c.bf16 %v2963_v4, %v2961_v3  ;;  %v2964_v18 = vld [vmem:[%s5323_s5 + $0x190] sm:$0xff]  ;;  %v2966_v19 = vld [vmem:[%s5323_s5 + $0x1a0] sm:$0xff] }
 0x12e   : > { %v1039_v21 = vmax.f32 %v1033_v32, 0.0  ;;  %3346 = vmatprep.subr.bf16.mxu1 %v3345_v33  ;;  %v2940_v32 = vld [vmem:[%s5322_s4 + $0x1d0] sm:$0xff]  ;;  %v3465_v20 = vpack.c.bf16 %v2966_v19, %v2964_v18  ;;  %v2969_v24 = vld [vmem:[%s5323_s5 + $0x1b8] sm:$0xff]  ;;  %v2971_v25 = vld [vmem:[%s5323_s5 + $0x1c8] sm:$0xff] }
 0x12f   : > { %3348 = vmatpush1.bf16.msra.mxu1 %v3347_v31  ;;  %v2968_v27 = vld [vmem:[%s5323_s5 + $0x1b0] sm:$0xff]  ;;  %v1449_v4 = vld [vmem:[%s5323_s5 + $0x68] sm:$0xff]  ;;  %v1452_v19 = vld [vmem:[%s5323_s5 + $0x80] sm:$0xff] }
 0x130   : > { %1053 = vmatprep.subr.mxu1 %v1039_v21  ;;  %3439 = vmatpush1.bf16.msra.mxu0 %v3438_v29  ;;  %v2970_v29 = vld [vmem:[%s5323_s5 + $0x1c0] sm:$0xff]  ;;  %v1446_v3 = vld [vmem:[%s5323_s5 + $0x50] sm:$0xff] }
 0x131   : > { %3440 = vmatprep.subr.bf16.mxu0 %v3863_v23 }
 0x133   : > { %1054 = vmatpush1.msra.mxu1 %v1038_v22 }
 0x134   : > { %2904 = vmatmul.mubr.msk.f32.vlgmr.msra.gmra.mrb[0].mxu1 %vm1042_vm7, %v1040_v34  ;;  %3350 = vmatprep.subr.bf16.mxu1 %v3345_v33  ;;  %v2947_v34 = vld [vmem:[%s5323_s5 + $0x108] sm:$0xff] }
 0x135   : > { %3352 = vmatpush1.bf16.msra.mxu1 %v3347_v31  ;;  %1119 = vmatprep.mubr.f32.mxu1 %v3861_v7  ;;  %v1245_v31 = vld [vmem:[%s5322_s4 + $0xe8] sm:$0xff] }
 0x136   : > { %1139 = vmatprep.subr.mxu1 %v1039_v21  ;;  %v3396_v33 = vpack.c.bf16 %v1245_v31, %v1244_v30  ;;  %v3441_v21 = vpack.c.bf16 %v2941_v10, %v2940_v32  ;;  %v3469_v30 = vpack.c.bf16 %v2970_v29, %v2968_v27  ;;  %v2973_v31 = vld [vmem:[%s5323_s5 + $0x1d8] sm:$0xff]  ;;  %v1437_v32 = vld [vmem:[%s5323_s5 + $0x8] sm:$0xff]  ;;  %v2972_v10 = vld [vmem:[%s5323_s5 + $0x1d0] sm:$0xff] }
 0x137   : > { %v1456_v29 = vld [vmem:[%s5323_s5 + $0xa0] sm:$0xff] }
 0x138   : > { %2905 = vmatmul.mubr.msk.f32.gmra.mrb[2].mxu1 %vm1042_vm7, %v1041_v28  ;;  %3442 = vmatpush1.bf16.msra.mxu0 %v3441_v21 }
 0x139   : > { %1140 = vmatpush1.msra.mxu1 %v1038_v22  ;;  %1199 = vmatprep.mubr.f32.mxu1 %v3861_v7  ;;  %v2945_v22 = vld [vmem:[%s5323_s5 + $0xf8] sm:$0xff] }
 0x13a   : > { %3353 = vmatprep.subr.bf16.mxu1 %v3863_v23  ;;  %v3443_v28 = vpack.c.bf16 %v2947_v34, %v2945_v22 }
 0x13c   : > { %2908 = vmatmul.mubr.msk.f32.vlgmr.msra.gmra.mrb[4].mxu1 %vm1042_vm7, %v2906_v37 }
 0x13d   : > { %1205 = vmatprep.mubr.f32.mxu1 %v3861_v7  ;;  %3355 = vmatpush1.bf16.msra.mxu1 %v3354_v38 }
 0x13e   : > { %3356 = vmatprep.subr.bf16.mxu1 %v3863_v23 }
 0x140   : > { %2909 = vmatmul.mubr.msk.f32.gmra.mrb[6].mxu1 %vm1042_vm7, %v2907_v41 }
 0x141   : > { %3358 = vmatpush1.bf16.msra.mxu1 %v3357_v42  ;;  %v2949_v42 = vld [vmem:[%s5323_s5 + $0x118] sm:$0xff] }
 0x142   : > { %3359 = vmatprep.subr.bf16.mxu1 %v3863_v23 }
 0x145   : > { %3361 = vmatpush1.bf16.msra.mxu1 %v3360_v45 }
 0x146   : > { %3362 = vmatprep.subr.bf16.mxu1 %v3863_v23 }
 0x149   : > { %3364 = vmatpush1.bf16.msra.mxu1 %v3363_v48  ;;  %v3447_v48 = vpack.c.bf16 %v2951_v43, %v2949_v42 }
 0x14a   : > { %3365 = vmatprep.subr.bf16.mxu1 %v3863_v23 }
 0x14d   : > { %3367 = vmatpush1.bf16.msra.mxu1 %v3366_v51 }
 0x14e   : > { %3368 = vmatprep.subr.bf16.mxu1 %v3863_v23 }
 0x151   : > { %3370 = vmatpush1.bf16.msra.mxu1 %v3369_v54 }
 0x152   : > { %3371 = vmatprep.subr.bf16.mxu1 %v3863_v23 }
 0x155   : > { %3373 = vmatpush1.bf16.msra.mxu1 %v3372_v57  ;;  %v3449_v57 = vpack.c.bf16 %v2950_v50, %v2948_v49 }
 0x156   : > { %3374 = vmatprep.subr.bf16.mxu1 %v3863_v23 }
 0x159   : > { %3376 = vmatpush1.bf16.msra.mxu1 %v3375_v60  ;;  %v2954_v60 = vld [vmem:[%s5323_s5 + $0x140] sm:$0xff] }
 0x15a   : > { %3377 = vmatprep.subr.bf16.mxu1 %v3863_v23 }
 0x15d   : > { %3379 = vmatpush1.bf16.msra.mxu1 %v3378_v63  ;;  %v3453_v63 = vpack.c.bf16 %v2954_v60, %v2952_v59  ;;  %v1445_v59 = vld [vmem:[%s5323_s5 + $0x48] sm:$0xff]  ;;  %v1447_v60 = vld [vmem:[%s5323_s5 + $0x58] sm:$0xff] }
 0x15e   : > { %3380 = vmatprep.subr.bf16.mxu1 %v3863_v23 }
 0x161   : > { %3382 = vmatpush1.bf16.msra.mxu1 %v3381_v2  ;;  %v2958_v2 = vld [vmem:[%s5323_s5 + $0x160] sm:$0xff] }
 0x162   : > { %3383 = vmatprep.subr.bf16.mxu1 %v3863_v23 }
 0x165   : > { %3385 = vmatpush1.bf16.msra.mxu1 %v3384_v8  ;;  %v3457_v8 = vpack.c.bf16 %v2958_v2, %v2956_v1  ;;  %v3479_v1 = vpack.c.bf16 %v1447_v60, %v1445_v59  ;;  %v1444_v2 = vld [vmem:[%s5323_s5 + $0x40] sm:$0xff]  ;;  %v2993_v59 = vld [vmem:[%s5323_s5 + $0x268] sm:$0xff]  ;;  %v2995_v60 = vld [vmem:[%s5323_s5 + $0x278] sm:$0xff] }
 0x166   : > { %3386 = vmatprep.subr.bf16.mxu1 %v3863_v23 }
 0x169   : > { %3388 = vmatpush1.bf16.msra.mxu1 %v3387_v13  ;;  %v2962_v13 = vld [vmem:[%s5323_s5 + $0x180] sm:$0xff] }
 0x16a   : > { %3389 = vmatprep.subr.bf16.mxu1 %v3863_v23  ;;  %v3461_v16 = vpack.c.bf16 %v2962_v13, %v2960_v12  ;;  %v1448_v13 = vld [vmem:[%s5323_s5 + $0x60] sm:$0xff] }
 0x16d   : > { %3391 = vmatpush1.bf16.msra.mxu1 %v3390_v17  ;;  %v3463_v17 = vpack.c.bf16 %v2967_v15, %v2965_v14  ;;  %v1450_v14 = vld [vmem:[%s5323_s5 + $0x70] sm:$0xff]  ;;  %v1453_v15 = vld [vmem:[%s5323_s5 + $0x88] sm:$0xff] }
 0x16e   : > { %3392 = vmatprep.subr.bf16.mxu1 %v3863_v23 }
 0x171   : > { %3394 = vmatpush1.bf16.msra.mxu1 %v3393_v26  ;;  %v3467_v26 = vpack.c.bf16 %v2971_v25, %v2969_v24  ;;  %v1457_v24 = vld [vmem:[%s5323_s5 + $0xa8] sm:$0xff]  ;;  %v1459_v25 = vld [vmem:[%s5323_s5 + $0xb8] sm:$0xff] }
 0x172   : > { %3395 = vmatprep.subr.bf16.mxu1 %v3863_v23  ;;  %v3491_v27 = vpack.c.bf16 %v1459_v25, %v1457_v24  ;;  %v3005_v25 = vld [vmem:[%s5323_s5 + $0x2c8] sm:$0xff] }
 0x175   : > { %3397 = vmatpush1.bf16.msra.mxu1 %v3396_v33  ;;  %v1439_v33 = vld [vmem:[%s5323_s5 + $0x18] sm:$0xff] }
 0x176   : > { %3444 = vmatprep.subr.bf16.mxu1 %v3443_v28  ;;  %v3471_v21 = vpack.c.bf16 %v1439_v33, %v1437_v32  ;;  %v1463_v32 = vld [vmem:[%s5323_s5 + $0xd8] sm:$0xff] }
 0x207   : > { %v1115_v35 = vpop.f32.mrb[0].mxu1 }
 0x208   : > { %v1117_v36 = vpop.f32.mrb[1].mxu1 }
 0x20b   : > { %v1121_v37 = vpop.f32.mrb[2].mxu1 }
 0x20c   : > { %v1123_v38 = vpop.f32.mrb[3].mxu1 }
 0x20f   : > { %v1201_v41 = vpop.f32.mrb[4].mxu1 }
 0x210   : > { %v1212_v44 = vmax.f32 %v1115_v35, %v1201_v41  ;;  %v1203_v45 = vpop.f32.mrb[5].mxu1 }
 0x211   : > { %v1213_v46 = vmax.f32 %v1117_v36, %v1203_v45  ;;  %v1441_v45 = vld [vmem:[%s5323_s5 + $0x28] sm:$0xff] }
 0x213   : > { %v1207_v51 = vpop.f32.mrb[6].mxu1  ;;  %2910 = vmatprep.mubr.msk.f32.mxu1 %vm1246_vm8, %v1213_v46  ;;  %2942 = vmatprep.mubr.msk.f32.mxu0 %vm1246_vm8, %v1213_v46  ;;  %v1443_v46 = vld [vmem:[%s5323_s5 + $0x38] sm:$0xff] }
 0x214   : > { %v1214_v54 = vmax.f32 %v1121_v37, %v1207_v51  ;;  %v1209_v55 = vpop.f32.mrb[7].mxu1  ;;  %1318 = vmatmul.mubr.f32.vlgmr.msra.gmra.mrb[8].mxu1 %v1212_v44  ;;  %1424 = vmatmul.mubr.f32.vlgmr.msra.gmra.mrb[6].mxu0 %v1212_v44  ;;  %v1436_v37 = vld [vmem:[%s5323_s5] sm:$0xff] }
 0x215   : > { %v1215_v56 = vmax.f32 %v1123_v38, %v1209_v55  ;;  %3446 = vmatpush1.bf16.msra.mxu1 %v3445_v47  ;;  %v1438_v38 = vld [vmem:[%s5323_s5 + $0x10] sm:$0xff]  ;;  %v3475_v55 = vpack.c.bf16 %v1443_v46, %v1441_v45  ;;  %v2980_v46 = vld [vmem:[%s5323_s5 + $0x200] sm:$0xff] }
 0x216   : > { %3448 = vmatprep.subr.bf16.mxu1 %v3447_v48  ;;  %v3473_v44 = vpack.c.bf16 %v1438_v38, %v1436_v37  ;;  %v2979_v37 = vld [vmem:[%s5323_s5 + $0x1f8] sm:$0xff]  ;;  %v2976_v38 = vld [vmem:[%s5323_s5 + $0x1e0] sm:$0xff] }
 0x217   : > { %2911 = vmatprep.mubr.msk.f32.mxu1 %vm1246_vm8, %v1215_v56  ;;  %2943 = vmatprep.mubr.msk.f32.mxu0 %vm1246_vm8, %v1215_v56  ;;  %v1440_v56 = vld [vmem:[%s5323_s5 + $0x20] sm:$0xff] }
 0x218   : > { %1323 = vmatmul.mubr.f32.gmra.mrb[10].mxu1 %v1214_v54  ;;  %1429 = vmatmul.mubr.f32.gmra.mrb[8].mxu0 %v1214_v54 }
 0x219   : > { %3450 = vmatpush1.bf16.msra.mxu1 %v3449_v57  ;;  %1569 = vmatprep.mubr.f32.mxu1 %v3861_v7  ;;  %v1442_v57 = vld [vmem:[%s5323_s5 + $0x30] sm:$0xff] }
 0x21a   : > { %3452 = vmatprep.subr.bf16.mxu1 %v3451_v58  ;;  %2137 = vmatprep.mubr.f32.mxu0 %v3861_v7 }
 0x21d   : > { %3454 = vmatpush1.bf16.msra.mxu1 %v3453_v63 }
 0x21e   : > { %3456 = vmatprep.subr.bf16.mxu1 %v3455_v0  ;;  %v3477_v0 = vpack.c.bf16 %v1442_v57, %v1440_v56  ;;  %v2988_v57 = vld [vmem:[%s5323_s5 + $0x240] sm:$0xff] }
 0x221   : > { %3458 = vmatpush1.bf16.msra.mxu1 %v3457_v8  ;;  %v1451_v8 = vld [vmem:[%s5323_s5 + $0x78] sm:$0xff] }
 0x222   : > { %3460 = vmatprep.subr.bf16.mxu1 %v3459_v11  ;;  %v3481_v11 = vpack.c.bf16 %v1446_v3, %v1444_v2  ;;  %v3483_v12 = vpack.c.bf16 %v1451_v8, %v1449_v4  ;;  %v2992_v2 = vld [vmem:[%s5323_s5 + $0x260] sm:$0xff]  ;;  %v2994_v3 = vld [vmem:[%s5323_s5 + $0x270] sm:$0xff]  ;;  %v2997_v4 = vld [vmem:[%s5323_s5 + $0x288] sm:$0xff] }
 0x223   : > { %v2999_v8 = vld [vmem:[%s5323_s5 + $0x298] sm:$0xff] }
 0x225   : > { %3462 = vmatpush1.bf16.msra.mxu1 %v3461_v16  ;;  %v1455_v16 = vld [vmem:[%s5323_s5 + $0x98] sm:$0xff] }
 0x226   : > { %3464 = vmatprep.subr.bf16.mxu1 %v3463_v17  ;;  %v3485_v17 = vpack.c.bf16 %v1450_v14, %v1448_v13  ;;  %v3487_v18 = vpack.c.bf16 %v1455_v16, %v1453_v15  ;;  %v2996_v13 = vld [vmem:[%s5323_s5 + $0x280] sm:$0xff]  ;;  %v2998_v14 = vld [vmem:[%s5323_s5 + $0x290] sm:$0xff]  ;;  %v3001_v15 = vld [vmem:[%s5323_s5 + $0x2a8] sm:$0xff] }
 0x227   : > { %v3003_v16 = vld [vmem:[%s5323_s5 + $0x2b8] sm:$0xff] }
 0x229   : > { %3466 = vmatpush1.bf16.msra.mxu1 %v3465_v20  ;;  %v1454_v20 = vld [vmem:[%s5323_s5 + $0x90] sm:$0xff] }
 0x22a   : > { %3468 = vmatprep.subr.bf16.mxu1 %v3467_v26  ;;  %v3489_v26 = vpack.c.bf16 %v1454_v20, %v1452_v19  ;;  %v3000_v19 = vld [vmem:[%s5323_s5 + $0x2a0] sm:$0xff]  ;;  %v3002_v20 = vld [vmem:[%s5323_s5 + $0x2b0] sm:$0xff] }
 0x22b   : > { %v3525_v24 = vpack.c.bf16 %v3002_v20, %v3000_v19  ;;  %v3042_v20 = vld [vmem:[%s5323_s5 + $0x3e0] sm:$0xff] }
 0x22d   : > { %3470 = vmatpush1.bf16.msra.mxu1 %v3469_v30  ;;  %v1458_v30 = vld [vmem:[%s5323_s5 + $0xb0] sm:$0xff] }
 0x22e   : > { %1533 = vmatprep.subr.mxu1 %v2973_v31  ;;  %v1461_v31 = vld [vmem:[%s5323_s5 + $0xc8] sm:$0xff]  ;;  %v3493_v33 = vpack.c.bf16 %v1458_v30, %v1456_v29  ;;  %v3007_v29 = vld [vmem:[%s5323_s5 + $0x2d0] sm:$0xff]  ;;  %v3009_v30 = vld [vmem:[%s5323_s5 + $0x2e0] sm:$0xff] }
 0x231   : > { %1534 = vmatpush1.msra.mxu1 %v2972_v10  ;;  %v3495_v10 = vpack.c.bf16 %v1463_v32, %v1461_v31  ;;  %v3012_v31 = vld [vmem:[%s5323_s5 + $0x2f8] sm:$0xff]  ;;  %v3014_v32 = vld [vmem:[%s5323_s5 + $0x308] sm:$0xff] }
 0x232   : > { %3472 = vmatprep.subr.bf16.mxu1 %v3471_v21  ;;  %v1460_v21 = vld [vmem:[%s5323_s5 + $0xc0] sm:$0xff] }
 0x2e7   : > { %v1319_v22 = vpop.f32.mrb[8].mxu1  ;;  %v1425_v34 = vpop.f32.mrb[6].mxu0 }
 0x2e8   : > { %v4546_v28 = vmax.f32 %v1319_v22, %v1425_v34  ;;  %v1321_v35 = vpop.f32.mrb[9].mxu1  ;;  %v1427_v36 = vpop.f32.mrb[7].mxu0  ;;  %v1462_v22 = vld [vmem:[%s5323_s5 + $0xd0] sm:$0xff] }
 0x2e9   : > { %v3497_v34 = vpack.c.bf16 %v1462_v22, %v1460_v21  ;;  %v1465_v35 = vld [vmem:[%s5323_s5 + $0xe8] sm:$0xff]  ;;  %v3529_v21 = vpack.c.bf16 %v3009_v30, %v3007_v29  ;;  %v3531_v22 = vpack.c.bf16 %v3014_v32, %v3012_v31  ;;  %v3046_v30 = vld [vmem:[%s5323_s5 + $0x400] sm:$0xff]  ;;  %v3048_v31 = vld [vmem:[%s5323_s5 + $0x410] sm:$0xff] }
 0x2ea   : > { %v1499_v47 = vrot.slane %v4546_v28, 1  ;;  %v1680_v48 = vrot.slane %v4546_v28, 2  ;;  %v1789_v49 = vrot.slane %v4546_v28, 3  ;;  %v1898_v50 = vrot.slane %v4546_v28, 4  ;;  %v2977_v36 = vld [vmem:[%s5323_s5 + $0x1e8] sm:$0xff] }
 0x2eb   : > { %v1324_v39 = vpop.f32.mrb[10].mxu1  ;;  %v1430_v40 = vpop.f32.mrb[8].mxu0  ;;  %v3051_v32 = vld [vmem:[%s5323_s5 + $0x428] sm:$0xff] }
 0x2ec   : > { %v1435_v41 = vmax.f32 %v1324_v39, %v1430_v40  ;;  %v1326_v42 = vpop.f32.mrb[11].mxu1  ;;  %v1432_v43 = vpop.f32.mrb[9].mxu0  ;;  %v2978_v39 = vld [vmem:[%s5323_s5 + $0x1f0] sm:$0xff]  ;;  %v2981_v40 = vld [vmem:[%s5323_s5 + $0x208] sm:$0xff] }
 0x2ed   : > { %v1464_v42 = vld [vmem:[%s5323_s5 + $0xe0] sm:$0xff]  ;;  %v3499_v43 = vpack.c.bf16 %v2979_v37, %v2977_v36  ;;  %v3016_v36 = vld [vmem:[%s5323_s5 + $0x318] sm:$0xff]  ;;  %v3018_v37 = vld [vmem:[%s5323_s5 + $0x328] sm:$0xff] }
 0x2ee   : > { %v1500_v51 = vrot.slane %v1435_v41, 1  ;;  %v1681_v52 = vrot.slane %v1435_v41, 2  ;;  %v1790_v53 = vrot.slane %v1435_v41, 3  ;;  %v1899_v54 = vrot.slane %v1435_v41, 4  ;;  %v2983_v41 = vld [vmem:[%s5323_s5 + $0x218] sm:$0xff] }
 0x2ef   : > { %v3503_v45 = vpack.c.bf16 %v2983_v41, %v2981_v40  ;;  %v3015_v40 = vld [vmem:[%s5323_s5 + $0x310] sm:$0xff]  ;;  %v3017_v41 = vld [vmem:[%s5323_s5 + $0x320] sm:$0xff] }
 0x2f0   : > { %v1501_v58 = vsel %vm463_vm3, %v1499_v47, %v1500_v51  ;;  %v4578_v61 = vsel %vm672_vm5, %v1680_v48, %v1681_v52  ;;  %v4581_v62 = vsel %vm790_vm6, %v1789_v49, %v1790_v53  ;;  %v4584_v63 = vsel %vm478_vm0, %v1898_v50, %v1899_v54  ;;  %v2982_v47 = vld [vmem:[%s5323_s5 + $0x210] sm:$0xff]  ;;  %v2985_v48 = vld [vmem:[%s5323_s5 + $0x228] sm:$0xff]  ;;  %v2987_v49 = vld [vmem:[%s5323_s5 + $0x238] sm:$0xff] }
 0x2f1   : > { %2974 = vmatmul.mubr.msk.f32.vlgmr.msra.gmra.mrb[12].mxu1 %vm1502_vm9, %v1501_v58  ;;  %v3505_v50 = vpack.c.bf16 %v2982_v47, %v2980_v46  ;;  %v3507_v51 = vpack.c.bf16 %v2987_v49, %v2985_v48  ;;  %v2984_v52 = vld [vmem:[%s5323_s5 + $0x220] sm:$0xff]  ;;  %v2986_v53 = vld [vmem:[%s5323_s5 + $0x230] sm:$0xff]  ;;  %v2989_v54 = vld [vmem:[%s5323_s5 + $0x248] sm:$0xff]  ;;  %vm2760_vm0 = vcmask 73728  }
 0x2f2   : > { %3474 = vmatpush1.bf16.msra.mxu1 %v3473_v44  ;;  %1642 = vmatprep.mubr.f32.mxu1 %v3861_v7  ;;  %v3501_v44 = vpack.c.bf16 %v2978_v39, %v2976_v38  ;;  %v2990_v58 = vld [vmem:[%s5323_s5 + $0x250] sm:$0xff]  ;;  %v3535_v39 = vpack.c.bf16 %v3018_v37, %v3016_v36  ;;  %v3021_v46 = vld [vmem:[%s5323_s5 + $0x340] sm:$0xff]  ;;  %v3024_v47 = vld [vmem:[%s5323_s5 + $0x358] sm:$0xff] }
 0x2f3   : > { %3476 = vmatprep.subr.bf16.mxu1 %v3475_v55  ;;  %v3509_v55 = vpack.c.bf16 %v2986_v53, %v2984_v52  ;;  %v3026_v48 = vld [vmem:[%s5323_s5 + $0x368] sm:$0xff]  ;;  %v3025_v52 = vld [vmem:[%s5323_s5 + $0x360] sm:$0xff]  ;;  %v3028_v53 = vld [vmem:[%s5323_s5 + $0x378] sm:$0xff] }
 0x2f6   : > { %3478 = vmatpush1.bf16.msra.mxu1 %v3477_v0  ;;  %v3513_v0 = vpack.c.bf16 %v2990_v58, %v2988_v57  ;;  %v3029_v57 = vld [vmem:[%s5323_s5 + $0x380] sm:$0xff]  ;;  %v3032_v58 = vld [vmem:[%s5323_s5 + $0x398] sm:$0xff] }
 0x2f7   : > { %3480 = vmatprep.subr.bf16.mxu1 %v3479_v1  ;;  %v3515_v1 = vpack.c.bf16 %v2995_v60, %v2993_v59  ;;  %v3034_v59 = vld [vmem:[%s5323_s5 + $0x3a8] sm:$0xff] }
 0x2fa   : > { %3482 = vmatpush1.bf16.msra.mxu1 %v3481_v11  ;;  %v3517_v11 = vpack.c.bf16 %v2994_v3, %v2992_v2  ;;  %v3033_v2 = vld [vmem:[%s5323_s5 + $0x3a0] sm:$0xff] }
 0x2fb   : > { %3484 = vmatprep.subr.bf16.mxu1 %v3483_v12  ;;  %v3519_v12 = vpack.c.bf16 %v2999_v8, %v2997_v4  ;;  %v3036_v4 = vld [vmem:[%s5323_s5 + $0x3b8] sm:$0xff]  ;;  %v3039_v8 = vld [vmem:[%s5323_s5 + $0x3c8] sm:$0xff] }
 0x2fe   : > { %3486 = vmatpush1.bf16.msra.mxu1 %v3485_v17  ;;  %v3521_v17 = vpack.c.bf16 %v2998_v14, %v2996_v13  ;;  %v3040_v13 = vld [vmem:[%s5323_s5 + $0x3d0] sm:$0xff]  ;;  %v3043_v14 = vld [vmem:[%s5323_s5 + $0x3e8] sm:$0xff] }
 0x2ff   : > { %3488 = vmatprep.subr.bf16.mxu1 %v3487_v18  ;;  %v3523_v18 = vpack.c.bf16 %v3003_v16, %v3001_v15  ;;  %v3045_v15 = vld [vmem:[%s5323_s5 + $0x3f8] sm:$0xff]  ;;  %v3035_v16 = vld [vmem:[%s5323_s5 + $0x3b0] sm:$0xff] }
 0x300   : > { %v3559_v19 = vpack.c.bf16 %v3045_v15, %v3043_v14  ;;  %v2153_v14 = vld [vmem:[%s5326_s8 + $0x38] sm:$0xff] }
 0x302   : > { %3490 = vmatpush1.bf16.msra.mxu1 %v3489_v26  ;;  %v3008_v26 = vld [vmem:[%s5323_s5 + $0x2d8] sm:$0xff] }
 0x303   : > { %3492 = vmatprep.subr.bf16.mxu1 %v3491_v27  ;;  %v3010_v27 = vld [vmem:[%s5323_s5 + $0x2e8] sm:$0xff] }
 0x306   : > { %3494 = vmatpush1.bf16.msra.mxu1 %v3493_v33  ;;  %v3004_v33 = vld [vmem:[%s5323_s5 + $0x2c0] sm:$0xff] }
 0x307   : > { %3496 = vmatprep.subr.bf16.mxu1 %v3495_v10  ;;  %v3527_v10 = vpack.c.bf16 %v3010_v27, %v3008_v26  ;;  %v3049_v26 = vld [vmem:[%s5323_s5 + $0x418] sm:$0xff] }
 0x30a   : > { %3498 = vmatpush1.bf16.msra.mxu1 %v3497_v34  ;;  %v3011_v34 = vld [vmem:[%s5323_s5 + $0x2f0] sm:$0xff] }
 0x30b   : > { %1606 = vmatprep.subr.mxu1 %v1465_v35  ;;  %v3013_v35 = vld [vmem:[%s5323_s5 + $0x300] sm:$0xff] }
 0x30c   : > { %v3533_v38 = vpack.c.bf16 %v3013_v35, %v3011_v34  ;;  %v3055_v34 = vld [vmem:[%s5323_s5 + $0x448] sm:$0xff]  ;;  %v3057_v35 = vld [vmem:[%s5323_s5 + $0x458] sm:$0xff] }
 0x30d   : > { %v3571_v37 = vpack.c.bf16 %v3057_v35, %v3055_v34  ;;  %v3073_v34 = vld [vmem:[%s5326_s8 + $0xa0] sm:$0xff]  ;;  %v3074_v35 = vld [vmem:[%s5326_s8 + $0xa8] sm:$0xff] }
 0x30e   : > { %1607 = vmatpush1.msra.mxu1 %v1464_v42  ;;  %v3020_v42 = vld [vmem:[%s5323_s5 + $0x338] sm:$0xff] }
 0x30f   : > { %2975 = vmatmul.mubr.msk.f32.vlgmr.msra.gmra.mrb[12].mxu1 %vm1502_vm9, %v4546_v28  ;;  %3500 = vmatprep.subr.bf16.mxu1 %v3499_v43  ;;  %v2991_v28 = vld [vmem:[%s5323_s5 + $0x258] sm:$0xff]  ;;  %v3537_v43 = vpack.c.bf16 %v3017_v41, %v3015_v40  ;;  %v3059_v40 = vld [vmem:[%s5323_s5 + $0x468] sm:$0xff] }
 0x310   : > { %3502 = vmatpush1.bf16.msra.mxu1 %v3501_v44  ;;  %1749 = vmatprep.mubr.f32.mxu1 %v3861_v7  ;;  %v3511_v56 = vpack.c.bf16 %v2991_v28, %v2989_v54  ;;  %v3030_v54 = vld [vmem:[%s5323_s5 + $0x388] sm:$0xff]  ;;  %v3061_v41 = vld [vmem:[%s5323_s5 + $0x478] sm:$0xff] }
 0x311   : > { %3504 = vmatprep.subr.bf16.mxu1 %v3503_v45  ;;  %v3019_v45 = vld [vmem:[%s5323_s5 + $0x330] sm:$0xff] }
 0x312   : > { %v3541_v49 = vpack.c.bf16 %v3021_v46, %v3019_v45  ;;  %v3063_v45 = vld [vmem:[%s5323_s5 + $0x488] sm:$0xff]  ;;  %v3065_v46 = vld [vmem:[%s5323_s5 + $0x498] sm:$0xff] }
 0x314   : > { %3506 = vmatpush1.bf16.msra.mxu1 %v3505_v50  ;;  %v3543_v50 = vpack.c.bf16 %v3026_v48, %v3024_v47  ;;  %v3579_v48 = vpack.c.bf16 %v3065_v46, %v3063_v45  ;;  %v3077_v45 = vld [vmem:[%s5326_s8 + $0xc0] sm:$0xff]  ;;  %v3078_v46 = vld [vmem:[%s5326_s8 + $0xc8] sm:$0xff] }
 0x315   : > { %3508 = vmatprep.subr.bf16.mxu1 %v3507_v51  ;;  %v3023_v51 = vld [vmem:[%s5323_s5 + $0x350] sm:$0xff] }
 0x316   : > { %v3545_v28 = vpack.c.bf16 %v3025_v52, %v3023_v51  ;;  %v3067_v52 = vld [vmem:[%s5323_s5 + $0x4a8] sm:$0xff] }
 0x318   : > { %3510 = vmatpush1.bf16.msra.mxu1 %v3509_v55  ;;  %v3547_v55 = vpack.c.bf16 %v3030_v54, %v3028_v53  ;;  %v3066_v53 = vld [vmem:[%s5323_s5 + $0x4a0] sm:$0xff] }
 0x319   : > { %3512 = vmatprep.subr.bf16.mxu1 %v3511_v56  ;;  %v3027_v56 = vld [vmem:[%s5323_s5 + $0x370] sm:$0xff]  ;;  %v1976_v54 = vld [vmem:[%s5324_s6] sm:$0x3] }
 0x31a   : > { %v3549_v60 = vpack.c.bf16 %v3029_v57, %v3027_v56 }
 0x31c   : > { %3514 = vmatpush1.bf16.msra.mxu1 %v3513_v0  ;;  %v3551_v0 = vpack.c.bf16 %v3034_v59, %v3032_v58 }
 0x31d   : > { %3516 = vmatprep.subr.bf16.mxu1 %v3515_v1  ;;  %v3031_v1 = vld [vmem:[%s5323_s5 + $0x390] sm:$0xff] }
 0x31e   : > { %v3553_v3 = vpack.c.bf16 %v3033_v2, %v3031_v1  ;;  %v2148_v2 = vld [vmem:[%s5326_s8 + $0x10] sm:$0xff] }
 0x320   : > { %3518 = vmatpush1.bf16.msra.mxu1 %v3517_v11  ;;  %v3041_v11 = vld [vmem:[%s5323_s5 + $0x3d8] sm:$0xff] }
 0x321   : > { %3520 = vmatprep.subr.bf16.mxu1 %v3519_v12  ;;  %v3038_v12 = vld [vmem:[%s5323_s5 + $0x3c0] sm:$0xff] }
 0x324   : > { %3522 = vmatpush1.bf16.msra.mxu1 %v3521_v17  ;;  %v3555_v17 = vpack.c.bf16 %v3041_v11, %v3039_v8  ;;  %v2150_v8 = vld [vmem:[%s5326_s8 + $0x20] sm:$0xff]  ;;  %v2151_v11 = vld [vmem:[%s5326_s8 + $0x28] sm:$0xff] }
 0x325   : > { %3524 = vmatprep.subr.bf16.mxu1 %v3523_v18  ;;  %v3557_v18 = vpack.c.bf16 %v3040_v13, %v3038_v12  ;;  %v3590_v12 = vpack.c.bf16 %v2151_v11, %v2150_v8  ;;  %v2152_v13 = vld [vmem:[%s5326_s8 + $0x30] sm:$0xff] }
 0x326   : > { %v3593_v15 = vpack.c.bf16 %v2153_v14, %v2152_v13  ;;  %v3095_v8 = vld [vmem:[%s5327_s9 + $0x50] sm:$0xff]  ;;  %v2336_v14 = vld [vmem:[%s5327_s9 + $0x18] sm:$0xff] }
 0x327   : > { %v2335_v13 = vld [vmem:[%s5327_s9 + $0x10] sm:$0xff] }
 0x328   : > { %3526 = vmatpush1.bf16.msra.mxu1 %v3525_v24  ;;  %v3044_v24 = vld [vmem:[%s5323_s5 + $0x3f0] sm:$0xff] }
 0x329   : > { %1713 = vmatprep.subr.mxu1 %v3005_v25  ;;  %v3047_v25 = vld [vmem:[%s5323_s5 + $0x408] sm:$0xff]  ;;  %v3561_v27 = vpack.c.bf16 %v3044_v24, %v3042_v20  ;;  %v2157_v20 = vld [vmem:[%s5326_s8 + $0x58] sm:$0xff] }
 0x32a   : > { %v3563_v29 = vpack.c.bf16 %v3049_v26, %v3047_v25  ;;  %v2158_v25 = vld [vmem:[%s5326_s8 + $0x60] sm:$0xff]  ;;  %v2159_v26 = vld [vmem:[%s5326_s8 + $0x68] sm:$0xff] }
 0x32c   : > { %1714 = vmatpush1.msra.mxu1 %v3004_v33  ;;  %v3565_v33 = vpack.c.bf16 %v3048_v31, %v3046_v30  ;;  %v2161_v30 = vld [vmem:[%s5326_s8 + $0x78] sm:$0xff] }
 0x32d   : > { %3006 = vmatmul.mubr.msk.f32.vlgmr.msra.gmra.mrb[12].mxu1 %vm1502_vm9, %v4578_v61  ;;  %3528 = vmatprep.subr.bf16.mxu1 %v3527_v10  ;;  %v3022_v61 = vld [vmem:[%s5323_s5 + $0x348] sm:$0xff] }
 0x32e   : > { %3530 = vmatpush1.bf16.msra.mxu1 %v3529_v21  ;;  %1858 = vmatprep.mubr.f32.mxu1 %v3861_v7  ;;  %v3539_v44 = vpack.c.bf16 %v3022_v61, %v3020_v42  ;;  %v3050_v21 = vld [vmem:[%s5323_s5 + $0x420] sm:$0xff]  ;;  %v3575_v61 = vpack.c.bf16 %v3061_v41, %v3059_v40 }
 0x32f   : > { %3532 = vmatprep.subr.bf16.mxu1 %v3531_v22  ;;  %v3052_v22 = vld [vmem:[%s5323_s5 + $0x430] sm:$0xff] }
 0x330   : > { %v3569_v36 = vpack.c.bf16 %v3052_v22, %v3050_v21  ;;  %v2165_v21 = vld [vmem:[%s5326_s8 + $0x98] sm:$0xff] }
 0x332   : > { %3534 = vmatpush1.bf16.msra.mxu1 %v3533_v38  ;;  %v3054_v38 = vld [vmem:[%s5323_s5 + $0x440] sm:$0xff] }
 0x333   : > { %3536 = vmatprep.subr.bf16.mxu1 %v3535_v39  ;;  %v3056_v39 = vld [vmem:[%s5323_s5 + $0x450] sm:$0xff] }
 0x334   : > { %v3573_v42 = vpack.c.bf16 %v3056_v39, %v3054_v38 }
 0x336   : > { %3538 = vmatpush1.bf16.msra.mxu1 %v3537_v43  ;;  %v3058_v43 = vld [vmem:[%s5323_s5 + $0x460] sm:$0xff] }
 0x337   : > { %3540 = vmatprep.subr.bf16.mxu1 %v3539_v44  ;;  %v3060_v44 = vld [vmem:[%s5323_s5 + $0x470] sm:$0xff] }
 0x338   : > { %v3577_v47 = vpack.c.bf16 %v3060_v44, %v3058_v43  ;;  %v3076_v43 = vld [vmem:[%s5326_s8 + $0xb8] sm:$0xff] }
 0x33a   : > { %3542 = vmatpush1.bf16.msra.mxu1 %v3541_v49  ;;  %v3062_v49 = vld [vmem:[%s5323_s5 + $0x480] sm:$0xff] }
 0x33b   : > { %3544 = vmatprep.subr.bf16.mxu1 %v3543_v50  ;;  %v3064_v50 = vld [vmem:[%s5323_s5 + $0x490] sm:$0xff] }
 0x33c   : > { %v3581_v51 = vpack.c.bf16 %v3064_v50, %v3062_v49  ;;  %v3080_v49 = vld [vmem:[%s5326_s8 + $0xd8] sm:$0xff] }
 0x33e   : > { %3546 = vmatpush1.bf16.msra.mxu1 %v3545_v28  ;;  %v1981_v28 = vrot.slane %v1976_v54, %v1020_v6  ;;  %v1992_v6 = vld [vmem:[%s5325_s7] sm:$0xf] }
 0x33f   : > { %3548 = vmatprep.subr.bf16.mxu1 %v3547_v55  ;;  %v1985_v55 = vrot.slane %v1976_v54, %v1024_v9  ;;  %v3083_v54 = vld [vmem:[%s5326_s8 + $0xf0] sm:$0xff] }
 0x342   : > { %3550 = vmatpush1.bf16.msra.mxu1 %v3549_v60  ;;  %v2147_v60 = vld [vmem:[%s5326_s8 + $0x8] sm:$0xff] }
 0x343   : > { %3552 = vmatprep.subr.bf16.mxu1 %v3551_v0 }
 0x346   : > { %3554 = vmatpush1.bf16.msra.mxu1 %v3553_v3  ;;  %v2149_v3 = vld [vmem:[%s5326_s8 + $0x18] sm:$0xff] }
 0x347   : > { %1822 = vmatprep.subr.mxu1 %v3036_v4  ;;  %v3587_v4 = vpack.c.bf16 %v2149_v3, %v2148_v2  ;;  %v2333_v3 = vld [vmem:[%s5327_s9] sm:$0xff] }
 0x34a   : > { %1823 = vmatpush1.msra.mxu1 %v3035_v16  ;;  %v2154_v16 = vld [vmem:[%s5326_s8 + $0x40] sm:$0xff] }
 0x34b   : > { %3037 = vmatmul.mubr.msk.f32.vlgmr.msra.gmra.mrb[12].mxu1 %vm1502_vm9, %v4581_v62  ;;  %3556 = vmatprep.subr.bf16.mxu1 %v3555_v17  ;;  %v3053_v62 = vld [vmem:[%s5323_s5 + $0x438] sm:$0xff]  ;;  %v2155_v17 = vld [vmem:[%s5326_s8 + $0x48] sm:$0xff] }
 0x34c   : > { %3558 = vmatpush1.bf16.msra.mxu1 %v3557_v18  ;;  %1967 = vmatprep.mubr.f32.mxu1 %v3861_v7  ;;  %v3567_v10 = vpack.c.bf16 %v3053_v62, %v3051_v32  ;;  %v3596_v18 = vpack.c.bf16 %v2155_v17, %v2154_v16  ;;  %v2162_v32 = vld [vmem:[%s5326_s8 + $0x80] sm:$0xff]  ;;  %v2163_v62 = vld [vmem:[%s5326_s8 + $0x88] sm:$0xff] }
 0x34d   : > { %3560 = vmatprep.subr.bf16.mxu1 %v3559_v19  ;;  %v2156_v19 = vld [vmem:[%s5326_s8 + $0x50] sm:$0xff]  ;;  %v3097_v16 = vld [vmem:[%s5327_s9 + $0x60] sm:$0xff]  ;;  %v3098_v17 = vld [vmem:[%s5327_s9 + $0x68] sm:$0xff] }
 0x34e   : > { %v3599_v24 = vpack.c.bf16 %v2157_v20, %v2156_v19  ;;  %v3662_v19 = vpack.c.bf16 %v3098_v17, %v3097_v16  ;;  %v2337_v20 = vld [vmem:[%s5327_s9 + $0x20] sm:$0xff]  ;;  %v2676_v16 = vld [vmem:[%s5329_s11 + $0x10] sm:$0xff] }
 0x350   : > { %3562 = vmatpush1.bf16.msra.mxu1 %v3561_v27  ;;  %v3602_v27 = vpack.c.bf16 %v2159_v26, %v2158_v25  ;;  %v3099_v25 = vld [vmem:[%s5327_s9 + $0x70] sm:$0xff]  ;;  %v3100_v26 = vld [vmem:[%s5327_s9 + $0x78] sm:$0xff] }
 0x351   : > { %3564 = vmatprep.subr.bf16.mxu1 %v3563_v29  ;;  %v2160_v29 = vld [vmem:[%s5326_s8 + $0x70] sm:$0xff] }
 0x352   : > { %v3605_v31 = vpack.c.bf16 %v2161_v30, %v2160_v29  ;;  %v3665_v29 = vpack.c.bf16 %v3100_v26, %v3099_v25  ;;  %v2339_v30 = vld [vmem:[%s5327_s9 + $0x30] sm:$0xff] }
 0x353   : > { %v2680_v26 = vld [vmem:[%s5329_s11 + $0x30] sm:$0x3] }
 0x354   : > { %3566 = vmatpush1.bf16.msra.mxu1 %v3565_v33  ;;  %v3608_v33 = vpack.c.bf16 %v2163_v62, %v2162_v32  ;;  %v3101_v32 = vld [vmem:[%s5327_s9 + $0x80] sm:$0xff]  ;;  %v3102_v62 = vld [vmem:[%s5327_s9 + $0x88] sm:$0xff] }
 0x355   : > { %3568 = vmatprep.subr.bf16.mxu1 %v3567_v10  ;;  %v2164_v10 = vld [vmem:[%s5326_s8 + $0x90] sm:$0xff] }
 0x356   : > { %v3611_v22 = vpack.c.bf16 %v2165_v21, %v2164_v10  ;;  %v3668_v10 = vpack.c.bf16 %v3102_v62, %v3101_v32  ;;  %v2341_v21 = vld [vmem:[%s5327_s9 + $0x40] sm:$0xff] }
 0x358   : > { %3570 = vmatpush1.bf16.msra.mxu1 %v3569_v36 }
 0x359   : > { %3572 = vmatprep.subr.bf16.mxu1 %v3571_v37 }
 0x35c   : > { %3574 = vmatpush1.bf16.msra.mxu1 %v3573_v42  ;;  %v3614_v42 = vpack.c.bf16 %v3074_v35, %v3073_v34  ;;  %v3103_v35 = vld [vmem:[%s5327_s9 + $0x90] sm:$0xff] }
 0x35d   : > { %3576 = vmatprep.subr.bf16.mxu1 %v3575_v61  ;;  %v3075_v61 = vld [vmem:[%s5326_s8 + $0xb0] sm:$0xff] }
 0x35e   : > { %v3617_v44 = vpack.c.bf16 %v3076_v43, %v3075_v61 }
 0x360   : > { %3578 = vmatpush1.bf16.msra.mxu1 %v3577_v47  ;;  %v3620_v47 = vpack.c.bf16 %v3078_v46, %v3077_v45  ;;  %v3108_v46 = vld [vmem:[%s5327_s9 + $0xb0] sm:$0xff] }
 0x361   : > { %3580 = vmatprep.subr.bf16.mxu1 %v3579_v48  ;;  %v3079_v48 = vld [vmem:[%s5326_s8 + $0xd0] sm:$0xff] }
 0x362   : > { %v3623_v50 = vpack.c.bf16 %v3080_v49, %v3079_v48  ;;  %v3110_v49 = vld [vmem:[%s5327_s9 + $0xc0] sm:$0xff] }
 0x364   : > { %3582 = vmatpush1.bf16.msra.mxu1 %v3581_v51  ;;  %v3081_v51 = vld [vmem:[%s5326_s8 + $0xe0] sm:$0xff] }
 0x365   : > { %1931 = vmatprep.subr.mxu1 %v3067_v52  ;;  %v3082_v52 = vld [vmem:[%s5326_s8 + $0xe8] sm:$0xff] }
 0x368   : > { %1932 = vmatpush1.msra.mxu1 %v3066_v53  ;;  %v3626_v53 = vpack.c.bf16 %v3082_v52, %v3081_v51  ;;  %v3112_v52 = vld [vmem:[%s5327_s9 + $0xd0] sm:$0xff] }
 0x369   : > { %3068 = vmatmul.mubr.msk.f32.vlgmr.msra.gmra.mrb[12].mxu1 %vm1502_vm9, %v4584_v63  ;;  %v2146_v63 = vld [vmem:[%s5326_s8] sm:$0xff] }
 0x36a   : > { %2061 = vmatprep.mubr.f32.mxu1 %v3861_v7  ;;  %v3584_v9 = vpack.c.bf16 %v2147_v60, %v2146_v63  ;;  %v3088_v63 = vld [vmem:[%s5326_s8 + $0x118] sm:$0xff] }
 0x43c   : > { %v1969_v56 = vpop.f32.mrb[12].mxu1 }
 0x43d   : > { %v1988_v57 = vadd.f32 %v1981_v28, %v1969_v56  ;;  %v1971_v58 = vpop.f32.mrb[13].mxu1  ;;  %v3084_v28 = vld [vmem:[%s5326_s8 + $0xf8] sm:$0xff]  ;;  %v3085_v56 = vld [vmem:[%s5326_s8 + $0x100] sm:$0xff] }
 0x43e   : > { %v1989_v59 = vadd.f32 %v1985_v55, %v1971_v58  ;;  %v3629_v55 = vpack.c.bf16 %v3084_v28, %v3083_v54  ;;  %v3114_v28 = vld [vmem:[%s5327_s9 + $0xe0] sm:$0xff] }
 0x43f   : > { %v1990_v1 = vmax.f32 %v1988_v57, 0.0  ;;  %v3086_v57 = vld [vmem:[%s5326_s8 + $0x108] sm:$0xff] }
 0x440   : > { %v1991_v0 = vmax.f32 %v1989_v59, 0.0  ;;  %v3632_v58 = vpack.c.bf16 %v3086_v57, %v3085_v56  ;;  %v3087_v59 = vld [vmem:[%s5326_s8 + $0x110] sm:$0xff] }
 0x441   : > { %v3635_v60 = vpack.c.bf16 %v3088_v63, %v3087_v59  ;;  %v3117_v57 = vld [vmem:[%s5327_s9 + $0xf0] sm:$0xff] }
 0x442   : > { %1997 = vmatprep.subr.mxu1 %v1991_v0  ;;  %2073 = vmatprep.subr.mxu0 %v1991_v0  ;;  %v3089_v0 = vld [vmem:[%s5326_s8 + $0x120] sm:$0xff] }
 0x443   : > { %1998 = vmatpush1.msra.mxu1 %v1990_v1  ;;  %2074 = vmatpush1.msra.mxu0 %v1990_v1  ;;  %v3090_v1 = vld [vmem:[%s5326_s8 + $0x128] sm:$0xff] }
 0x444   : > { %3069 = vmatmul.mubr.msk.f32.vlgmr.msra.gmra.mrb[14].mxu1 %vm1993_vm10, %v1992_v6  ;;  %3071 = vmatmul.mubr.msk.f32.vlgmr.msra.gmra.mrb[10].mxu0 %vm1993_vm10, %v3070_v5  ;;  %v3638_v6 = vpack.c.bf16 %v3090_v1, %v3089_v0  ;;  %v3091_v5 = vld [vmem:[%s5326_s8 + $0x130] sm:$0xff]  ;;  %v3120_v0 = vld [vmem:[%s5327_s9 + $0x108] sm:$0xff] }
 0x445   : > { %3583 = vmatprep.subr.bf16.mxu0 %v3863_v23  ;;  %3643 = vmatprep.subr.bf16.mxu1 %v3863_v23 }
 0x446   : > { %3585 = vmatpush1.bf16.msra.mxu0 %v3584_v9  ;;  %v3092_v9 = vld [vmem:[%s5326_s8 + $0x138] sm:$0xff]  ;;  %3206 = vmatprep.mubr.msk.f32.mxu1 %vm3864_vm12, %v3861_v7 }
 0x447   : > { %3586 = vmatprep.subr.bf16.mxu0 %v3863_v23  ;;  %v3641_v2 = vpack.c.bf16 %v3092_v9, %v3091_v5  ;;  %v3122_v5 = vld [vmem:[%s5327_s9 + $0x118] sm:$0xff] }
 0x44a   : > { %3588 = vmatpush1.bf16.msra.mxu0 %v3587_v4  ;;  %v2334_v4 = vld [vmem:[%s5327_s9 + $0x8] sm:$0xff] }
 0x44b   : > { %3589 = vmatprep.subr.bf16.mxu0 %v3863_v23  ;;  %v3644_v11 = vpack.c.bf16 %v2334_v4, %v2333_v3  ;;  %v3124_v3 = vld [vmem:[%s5327_s9 + $0x128] sm:$0xff] }
 0x44d   : > { %3645 = vmatpush3.bf16.msra.mxu1 %v3644_v11  ;;  %v3126_v11 = vld [vmem:[%s5327_s9 + $0x138] sm:$0xff] }
 0x44e   : > { %3591 = vmatpush1.bf16.msra.mxu0 %v3590_v12  ;;  %v3096_v12 = vld [vmem:[%s5327_s9 + $0x58] sm:$0xff]  ;;  %3646 = vmatprep.subr.bf16.mxu1 %v3863_v23 }
 0x44f   : > { %3592 = vmatprep.subr.bf16.mxu0 %v3863_v23 }
 0x452   : > { %3594 = vmatpush1.bf16.msra.mxu0 %v3593_v15  ;;  %v3659_v15 = vpack.c.bf16 %v3096_v12, %v3095_v8  ;;  %v3125_v8 = vld [vmem:[%s5327_s9 + $0x130] sm:$0xff] }
 0x453   : > { %3595 = vmatprep.subr.bf16.mxu0 %v3863_v23  ;;  %v3701_v12 = vpack.c.bf16 %v3126_v11, %v3125_v8 }
 0x456   : > { %3597 = vmatpush1.bf16.msra.mxu0 %v3596_v18  ;;  %v3647_v18 = vpack.c.bf16 %v2336_v14, %v2335_v13  ;;  %v2674_v14 = vld [vmem:[%s5329_s11] sm:$0xff] }
 0x457   : > { %3598 = vmatprep.subr.bf16.mxu0 %v3863_v23 }
 0x458   : > { %3648 = vmatpush3.bf16.msra.mxu1 %v3647_v18  ;;  %v2677_v18 = vld [vmem:[%s5329_s11 + $0x18] sm:$0xff] }
 0x459   : > { %3649 = vmatprep.subr.bf16.mxu1 %v3863_v23 }
 0x45a   : > { %3600 = vmatpush1.bf16.msra.mxu0 %v3599_v24  ;;  %v2338_v24 = vld [vmem:[%s5327_s9 + $0x28] sm:$0xff] }
 0x45b   : > { %3601 = vmatprep.subr.bf16.mxu0 %v3863_v23 }
 0x45e   : > { %3603 = vmatpush1.bf16.msra.mxu0 %v3602_v27  ;;  %v3650_v27 = vpack.c.bf16 %v2338_v24, %v2337_v20  ;;  %v2678_v20 = vld [vmem:[%s5329_s11 + $0x20] sm:$0xff]  ;;  %v2679_v24 = vld [vmem:[%s5329_s11 + $0x28] sm:$0xff] }
 0x45f   : > { %3604 = vmatprep.subr.bf16.mxu0 %v3863_v23  ;;  %v3710_v25 = vpack.c.bf16 %v2679_v24, %v2678_v20 }
 0x460   : > { %3651 = vmatpush3.bf16.msra.mxu1 %v3650_v27 }
 0x461   : > { %3652 = vmatprep.subr.bf16.mxu1 %v3863_v23 }
 0x462   : > { %3606 = vmatpush1.bf16.msra.mxu0 %v3605_v31  ;;  %v2340_v31 = vld [vmem:[%s5327_s9 + $0x38] sm:$0xff] }
 0x463   : > { %3607 = vmatprep.subr.bf16.mxu0 %v3863_v23 }
 0x466   : > { %3609 = vmatpush1.bf16.msra.mxu0 %v3608_v33  ;;  %v3653_v33 = vpack.c.bf16 %v2340_v31, %v2339_v30 }
 0x467   : > { %3610 = vmatprep.subr.bf16.mxu0 %v3863_v23 }
 0x468   : > { %3654 = vmatpush3.bf16.msra.mxu1 %v3653_v33 }
 0x469   : > { %3655 = vmatprep.subr.bf16.mxu1 %v3863_v23 }
 0x46a   : > { %3612 = vmatpush1.bf16.msra.mxu0 %v3611_v22  ;;  %v2342_v22 = vld [vmem:[%s5327_s9 + $0x48] sm:$0xff] }
 0x46b   : > { %3613 = vmatprep.subr.bf16.mxu0 %v3863_v23  ;;  %v3656_v34 = vpack.c.bf16 %v2342_v22, %v2341_v21 }
 0x46d   : > { %3657 = vmatpush3.bf16.msra.mxu1 %v3656_v34 }
 0x46e   : > { %3703 = vmatprep.subr.bf16.mxu1 %v3863_v23 }
 0x517   : > { %v2063_v36 = vpop.f32.mrb[14].mxu1  ;;  %v2139_v37 = vpop.f32.mrb[10].mxu0 }
 0x518   : > { %v2144_v38 = vmax.f32 %v2063_v36, %v2139_v37  ;;  %v2065_v39 = vpop.f32.mrb[15].mxu1  ;;  %v2141_v40 = vpop.f32.mrb[11].mxu0  ;;  %v3104_v36 = vld [vmem:[%s5327_s9 + $0x98] sm:$0xff] }
 0x519   : > { %v2145_v41 = vmax.f32 %v2065_v39, %v2141_v40  ;;  %v3671_v37 = vpack.c.bf16 %v3104_v36, %v3103_v35  ;;  %v3106_v40 = vld [vmem:[%s5327_s9 + $0xa0] sm:$0xff] }
 0x51b   : > { %3072 = vmatprep.mubr.msk.f32.mxu0 %vm2166_vm11, %v2145_v41 }
 0x51c   : > { %2235 = vmatmul.mubr.f32.vlgmr.msra.gmra.mrb[12].mxu0 %v2144_v38 }
 0x51d   : > { %3615 = vmatpush1.bf16.msra.mxu0 %v3614_v42  ;;  %3093 = vmatprep.mubr.msk.f32.mxu0 %vm2166_vm11, %v2145_v41  ;;  %v3107_v41 = vld [vmem:[%s5327_s9 + $0xa8] sm:$0xff] }
 0x51e   : > { %3616 = vmatprep.subr.bf16.mxu0 %v3863_v23 }
 0x521   : > { %3618 = vmatpush1.bf16.msra.mxu0 %v3617_v44  ;;  %v3674_v44 = vpack.c.bf16 %v3107_v41, %v3106_v40 }
 0x522   : > { %3619 = vmatprep.subr.bf16.mxu0 %v3863_v23 }
 0x525   : > { %3621 = vmatpush1.bf16.msra.mxu0 %v3620_v47  ;;  %v3109_v47 = vld [vmem:[%s5327_s9 + $0xb8] sm:$0xff] }
 0x526   : > { %3622 = vmatprep.subr.bf16.mxu0 %v3863_v23  ;;  %v3677_v48 = vpack.c.bf16 %v3109_v47, %v3108_v46 }
 0x529   : > { %3624 = vmatpush1.bf16.msra.mxu0 %v3623_v50  ;;  %v3111_v50 = vld [vmem:[%s5327_s9 + $0xc8] sm:$0xff] }
 0x52a   : > { %3625 = vmatprep.subr.bf16.mxu0 %v3863_v23  ;;  %v3680_v51 = vpack.c.bf16 %v3111_v50, %v3110_v49 }
 0x52d   : > { %3627 = vmatpush1.bf16.msra.mxu0 %v3626_v53  ;;  %v3113_v53 = vld [vmem:[%s5327_s9 + $0xd8] sm:$0xff] }
 0x52e   : > { %3628 = vmatprep.subr.bf16.mxu0 %v3863_v23  ;;  %v3683_v54 = vpack.c.bf16 %v3113_v53, %v3112_v52 }
 0x531   : > { %3630 = vmatpush1.bf16.msra.mxu0 %v3629_v55  ;;  %v3115_v55 = vld [vmem:[%s5327_s9 + $0xe8] sm:$0xff] }
 0x532   : > { %3631 = vmatprep.subr.bf16.mxu0 %v3863_v23  ;;  %v3686_v56 = vpack.c.bf16 %v3115_v55, %v3114_v28 }
 0x535   : > { %3633 = vmatpush1.bf16.msra.mxu0 %v3632_v58  ;;  %v3118_v58 = vld [vmem:[%s5327_s9 + $0xf8] sm:$0xff] }
 0x536   : > { %3634 = vmatprep.subr.bf16.mxu0 %v3863_v23  ;;  %v3689_v59 = vpack.c.bf16 %v3118_v58, %v3117_v57 }
 0x539   : > { %3636 = vmatpush1.bf16.msra.mxu0 %v3635_v60  ;;  %v3119_v60 = vld [vmem:[%s5327_s9 + $0x100] sm:$0xff] }
 0x53a   : > { %3637 = vmatprep.subr.bf16.mxu0 %v3863_v23  ;;  %v3692_v1 = vpack.c.bf16 %v3120_v0, %v3119_v60 }
 0x53d   : > { %3639 = vmatpush1.bf16.msra.mxu0 %v3638_v6  ;;  %v3121_v6 = vld [vmem:[%s5327_s9 + $0x110] sm:$0xff] }
 0x53e   : > { %3640 = vmatprep.subr.bf16.mxu0 %v3863_v23  ;;  %v3695_v9 = vpack.c.bf16 %v3122_v5, %v3121_v6 }
 0x541   : > { %3642 = vmatpush1.bf16.msra.mxu0 %v3641_v2  ;;  %v3123_v2 = vld [vmem:[%s5327_s9 + $0x120] sm:$0xff] }
 0x542   : > { %3658 = vmatprep.subr.bf16.mxu0 %v3863_v23  ;;  %v3698_v4 = vpack.c.bf16 %v3124_v3, %v3123_v2 }
 0x544   : > { %2326 = vmatmul.mubr.f32.vlgmr.msra.gmra.mrb[14].mxu0 %v2144_v38 }
 0x545   : > { %3660 = vmatpush3.bf16.msra.mxu0 %v3659_v15  ;;  %3229 = vmatprep.mubr.msk.f32.mxu0 %vm3864_vm12, %v3861_v7  ;;  %v2675_v15 = vld [vmem:[%s5329_s11 + $0x8] sm:$0xff] }
 0x546   : > { %3661 = vmatprep.subr.bf16.mxu0 %v3863_v23  ;;  %v3704_v17 = vpack.c.bf16 %v2675_v15, %v2674_v14 }
 0x549   : > { %3663 = vmatpush3.bf16.msra.mxu0 %v3662_v19  ;;  %v3707_v19 = vpack.c.bf16 %v2677_v18, %v2676_v16 }
 0x54a   : > { %3664 = vmatprep.subr.bf16.mxu0 %v3863_v23 }
 0x54d   : > { %3666 = vmatpush3.bf16.msra.mxu0 %v3665_v29  ;;  %v2332_v29 = vld [vmem:[%s5328_s10] sm:$0x1] }
 0x54e   : > { %3667 = vmatprep.subr.bf16.mxu0 %v3863_v23 }
 0x551   : > { %3669 = vmatpush3.bf16.msra.mxu0 %v3668_v10 }
 0x552   : > { %3670 = vmatprep.subr.bf16.mxu0 %v3863_v23 }
 0x555   : > { %3672 = vmatpush3.bf16.msra.mxu0 %v3671_v37 }
 0x556   : > { %3673 = vmatprep.subr.bf16.mxu0 %v3863_v23 }
 0x5ef   : > { %v2236_v38 = vpop.f32.mrb[12].mxu0 }
 0x5f0   : > { %v2238_v39 = vpop.f32.mrb[13].mxu0 }
 0x617   : > { %v2327_v42 = vpop.f32.mrb[14].mxu0 }
 0x618   : > { %v2331_v61 = vmax.f32 %v2236_v38, %v2327_v42  ;;  %v2329_v43 = vpop.f32.mrb[15].mxu0 }
 0x61a   : > { %v2429_v45 = vrot.slane %v2331_v61, 1  ;;  %3207 = vmatmul.mubr.msk.f32.vlgmr.msra.gmra.mrb[16].mxu1 %vm2343_vm13, %v2331_v61  ;;  %v2514_v63 = vrot.slane %v2331_v61, 2  ;;  %v2599_v13 = vrot.slane %v2331_v61, 3 }
 0x61b   : > { %3292 = vmatprep.mubr.msk.f32.mxu1 %vm3864_vm12, %v3861_v7  ;;  %3705 = vmatpush3.bf16.msra.mxu1 %v3704_v17 }
 0x61c   : > { %3230 = vmatmul.mubr.msk.f32.vlgmr.msra.gmra.mrb[16].mxu0 %vm2343_vm13, %v2429_v45  ;;  %3706 = vmatprep.subr.bf16.mxu1 %v3863_v23 }
 0x61d   : > { %3675 = vmatpush3.bf16.msra.mxu0 %v3674_v44  ;;  %3252 = vmatprep.mubr.msk.f32.mxu0 %vm3864_vm12, %v3861_v7 }
 0x61e   : > { %3676 = vmatprep.subr.bf16.mxu0 %v3863_v23 }
 0x61f   : > { %3708 = vmatpush3.bf16.msra.mxu1 %v3707_v19 }
 0x620   : > { %3709 = vmatprep.subr.bf16.mxu1 %v3863_v23 }
 0x621   : > { %3678 = vmatpush3.bf16.msra.mxu0 %v3677_v48 }
 0x622   : > { %3679 = vmatprep.subr.bf16.mxu0 %v3863_v23 }
 0x623   : > { %3711 = vmatpush3.bf16.msra.mxu1 %v3710_v25 }
 0x624   : > { %3290 = vmatprep.subr.mxu1 %v3861_v7 }
 0x625   : > { %3681 = vmatpush3.bf16.msra.mxu0 %v3680_v51 }
 0x626   : > { %3682 = vmatprep.subr.bf16.mxu0 %v3863_v23 }
 0x627   : > { %3291 = vmatpush3.msk.msra.mxu1 %vm2686_vm14, %v2680_v26 }
 0x629   : > { %3684 = vmatpush3.bf16.msra.mxu0 %v3683_v54 }
 0x62a   : > { %3685 = vmatprep.subr.bf16.mxu0 %v3863_v23 }
 0x62d   : > { %3687 = vmatpush3.bf16.msra.mxu0 %v3686_v56 }
 0x62e   : > { %3688 = vmatprep.subr.bf16.mxu0 %v3863_v23 }
 0x630   : > { %3253 = vmatmul.mubr.msk.f32.vlgmr.msra.gmra.mrb[16].mxu0 %vm2343_vm13, %v2514_v63 }
 0x631   : > { %3690 = vmatpush3.bf16.msra.mxu0 %v3689_v59  ;;  %3275 = vmatprep.mubr.msk.f32.mxu0 %vm3864_vm12, %v3861_v7  ;;  %v2681_v7 = vld [vmem:[%s5330_s12] sm:$0x1] }
 0x632   : > { %3691 = vmatprep.subr.bf16.mxu0 %v3863_v23 }
 0x635   : > { %3693 = vmatpush3.bf16.msra.mxu0 %v3692_v1 }
 0x636   : > { %3694 = vmatprep.subr.bf16.mxu0 %v3863_v23 }
 0x639   : > { %3696 = vmatpush3.bf16.msra.mxu0 %v3695_v9 }
 0x63a   : > { %3697 = vmatprep.subr.bf16.mxu0 %v3863_v23 }
 0x63d   : > { %3699 = vmatpush3.bf16.msra.mxu0 %v3698_v4 }
 0x63e   : > { %3700 = vmatprep.subr.bf16.mxu0 %v3863_v23 }
 0x641   : > { %3702 = vmatpush3.bf16.msra.mxu0 %v3701_v12 }
 0x644   : > { %3276 = vmatmul.mubr.msk.f32.vlgmr.msra.gmra.mrb[16].mxu0 %vm2343_vm13, %v2599_v13 }
 0x6ed   : > { %v2413_v27 = vpop.f32.mrb[16].mxu1 }
 0x6ee   : > { %v3208_v23 = vpop.f32.mrb[17].mxu1  ;;  %v2417_v30 = vadd.f32 %v2413_v27, %v2332_v29 }
 0x717   : > { %v2668_v31 = vpop.f32.mrb[16].mxu0 }
 0x718   : > { %v3713_v32 = vadd.f32 %v2668_v31, %v2417_v30  ;;  %v3277_v62 = vpop.f32.mrb[17].mxu0 }
 0x71a   : > { %v2673_v33 = vmax.f32 %v3713_v32, 0.0 }
 0x71c   : > { %3293 = vmatmul.mubr.msk.f32.vlgmr.msra.gmra.mrb[18].mxu1 %vm2682_vm15, %v2673_v33 }
 0x7ef   : > { %v2756_v10 = vpop.f32.mrb[18].mxu1 }
 0x7f0   : > { %v2757_v21 = vadd.f32 %v2756_v10, %v2681_v7  ;;  %v3294_v22 = vpop.f32.mrb[19].mxu1 }
 0x7f2   : > { %v2761_v34 = vsel %vm2760_vm0, %v2757_v21, -inf }
 0x7f3   : > { %2762 = vmax.xlane.f32.xlu0 %v2761_v34 }
 0x880   : > { %v2763_v35 = vpop.xlane.xlu0 %2762 }
 0x881   : > { %v2764_v36 = vsub.f32 %v2757_v21, %v2763_v35 }
 0x883   : > { %v2765_v37 = vmul.f32 1.442695, %v2764_v36 }
 0x885   : > { %3793 = vpow2.f32 %v2765_v37 }
 0x88f   : > { %v3794_v38 = vpop.eup %3793 }
 0x890   : > { %v2767_v39 = vsel %vm2760_vm0, %v3794_v38, 0.0 }
 0x891   : > { %2768 = vadd.xlane.f32.xlu0 %v2767_v39 }
 0x91e   : > { %v2769_v40 = vpop.xlane.xlu0 %2768 }
 0x91f   : > { %3795 = vrcp.f32 %v2769_v40 }
 0x929   : > { %v3796_v41 = vpop.eup %3795 }
 0x92a   : > { %v2771_v42 = vmul.f32 %v3796_v41, %v3794_v38 }
 0x92c   : > { %2772 = vst.msk [vmem:[%s432_s27] sm:$0x1] %vm2760_vm0, %v2771_v42 }
 0x92d   : > { %3810 = shalt.err (!%p3807_p3)
}
 0x92e   : > { %s3811_s14 = scalar_lea.hbm %s5275_s30, 16  ;;  %s3815_s21 = scalar_lea.hbm %s5331_s13, 32 }
 0x92f   : > { %p3812_p4 = scmp.ne.s32.totalorder %s5275_s30, %s3811_s14  ;;  %p3816_p9 = scmp.lt.u32.totalorder %s5275_s30, %s5331_s13 }
 0x930   : > { %p3817_p10 = scmp.lt.u32.totalorder %s3815_s21, %s3811_s14  ;;  %p3819_p12 = scmp.lt.u32.totalorder %s3811_s14, %s5275_s30 }
 0x931   : > { %p3813_p7 = pnand %p3812_p4, %p3974_p5 }
 0x932   : > { %p3818_p11 = por %p3817_p10, %p3816_p9 }
 0x933   : > { %p3814_p8 = pneg %p3813_p7 }
 0x934   : > { %p3820_p13 = por %p3819_p12, %p3818_p11 }
 0x936   : > { %p3821_p0 = pnand %p3820_p13, %p3814_p8 }
 0x938   : > { %3824 = shalt.err (!%p3821_p0)
}
 0x939   : > { %3750 = dma.vmem_to_hbm [thread:$0]  (%p3974_p5), %s5277_s17, 16, %s5275_s30, %s2774_s15  }
 0x93a PF: > { %s5346_s23 = sld [smem:[#allocation5_spill]]  ;;  %p3756_p1 = scmp.ge.s32.totalorder %s3859_s28, 2 }
 0x93c   : > { %p3753_p2 = pnand %p3756_p1, %p3978_p6 }
 0x940   : > { %s2798_s29 = sand.u32 1, %s5346_s23  }
 0x941   : > { %s2799_s20 = scalar_lea.sflag [#allocation3], %s2798_s29 }
 0x942   : > { %3842 = dma.done.wait (!%p3753_p2), %s2799_s20, 16  }
 0x943   : > { %3844 = vsyncadd (!%p3753_p2), %s2799_s20, 4294967280  ;;  %s5348_s28 = sld [smem:[#allocation7_spill]]  ;;  %s5349_s14 = sld [smem:[#allocation6_spill]] }
 0x944   : > { %s5350_s27 = sld [smem:[#allocation8_spill]]  ;;  %s5351_s25 = smov %s3851_s26 }
 0x949   : > { %p23_p3 = scmp.ge.s32.totalorder %s5348_s28, 4   ;;  %s5352_s26 = smov %s5349_s14 }
 0x94b   :  { %25 = sbr.rel (!%p23_p3) target bundleno = 3 (0x3), region = 122 }
 0x952   :  { %2803 = vsyncpa [#allocation3], 1 }
 0x953   :  { %2805 = vsyncpa [#allocation3 + $0x1], 1 }

</bundles_post_ra>
